<compile_context>
chip_gen: v5e
topology: v5e:2x2
jax: 0.10.0
libtpu: 0.0.40
codegen_flags: <defaults>
</compile_context>

<pallas_src>
import jax
import jax.numpy as jnp
from jax.experimental import pallas as pl
from jax.experimental.pallas import tpu as pltpu

# Problem sizes implied by the PyTorch module.
H = W = 14
C_IN = 192
C_OUT = 48
KH = KW = 3
PAD = 1
HP, WP = H + 2 * PAD, W + 2 * PAD   # 16, 16
P = HP * WP                         # 256 padded spatial positions (lane axis)
TAPS = KH * KW                      # 9


def relu_conv_kernel(x_ref, w_ref, o_ref):
    """Fused ReLU + 3x3 conv, channels-first / flattened padded spatial.

    x_ref: (C_IN, P)            zero-padded input plane (ReLU(0)=0, so pad-then-ReLU is safe)
    w_ref: (TAPS*C_OUT, C_IN)   row tap*C_OUT + o holds W[o, :, kh, kw], tap = kh*KW + kw
    o_ref: (C_OUT, P)           conv output over the padded grid; valid region = [:14, :14] corner
    """
    # ReLU once over the whole plane.
    x = jnp.maximum(x_ref[...], 0.0)                                  # (192, 256)

    # Single MXU matmul covering all 9 taps: (432, 192) @ (192, 256) -> (432, 256), f32 acc.
    y = jnp.dot(w_ref[...], x, preferred_element_type=jnp.float32)

    # Combine taps: out[o, p] = sum_tap y[tap*C_OUT + o, p + kh*WP + kw].
    acc = y[0:C_OUT, :]                                               # tap (0,0): shift 0
    for kh in range(KH):
        for kw in range(KW):
            tap = kh * KW + kw
            if tap == 0:
                continue
            s = kh * WP + kw                                          # static shift in [1, 34]
            slab = y[tap * C_OUT:(tap + 1) * C_OUT, :]                # sublane-aligned (48, 256)
            # rolled[o, p] = slab[o, p + s]; wraparound only hits discarded pad positions.
            acc = acc + pltpu.roll(slab, shift=P - s, axis=1)
    o_ref[...] = acc.astype(o_ref.dtype)


@jax.jit
def relu_conv2d(x_nchw, w_oihw):
    """x_nchw: (1, C_IN, H, W); w_oihw: (C_OUT, C_IN, KH, KW) -> (1, C_OUT, H, W)."""
    assert x_nchw.shape == (1, C_IN, H, W)
    assert w_oihw.shape == (C_OUT, C_IN, KH, KW)

    # Only data-moving prep op: spatial zero-pad. Flattening spatial -> lanes is free.
    x_pad = jnp.pad(x_nchw[0], ((0, 0), (PAD, PAD), (PAD, PAD)))      # (192, 16, 16)
    x_flat = x_pad.reshape(C_IN, P)                                   # (192, 256)

    # OIHW -> (kh, kw, o, c) -> (9*48, 192): one stacked matmul matrix for all taps.
    w_all = jnp.transpose(w_oihw, (2, 3, 0, 1)).reshape(TAPS * C_OUT, C_IN)

    out_flat = pl.pallas_call(
        relu_conv_kernel,
        grid=(1,),
        in_specs=[
            pl.BlockSpec((C_IN, P), lambda i: (0, 0)),
            pl.BlockSpec((TAPS * C_OUT, C_IN), lambda i: (0, 0)),
        ],
        out_specs=pl.BlockSpec((C_OUT, P), lambda i: (0, 0)),
        out_shape=jax.ShapeDtypeStruct((C_OUT, P), jnp.float32),
        compiler_params=pltpu.CompilerParams(
            dimension_semantics=("arbitrary",),
        ),
    )(x_flat, w_all)

    # (48, 256) -> (48, 16, 16); valid outputs are the top-left 14x14 corner; already NCHW order.
    out = out_flat.reshape(C_OUT, HP, WP)[:, :H, :W]
    return out[None, ...]                                             # (1, 48, 14, 14)


if __name__ == "__main__":
    key = jax.random.PRNGKey(0)
    kx, kw = jax.random.split(key)

    x = jax.random.normal(kx, (1, C_IN, H, W), dtype=jnp.float32)
    w = jax.random.normal(kw, (C_OUT, C_IN, KH, KW), dtype=jnp.float32) * 0.05

    out = jax.block_until_ready(relu_conv2d(x, w))

    # Reference check with plain JAX conv (ReLU then conv, as in the PyTorch module).
    ref = jax.lax.conv_general_dilated(
        jnp.maximum(x, 0.0),
        w,
        window_strides=(1, 1),
        padding=((PAD, PAD), (PAD, PAD)),
        dimension_numbers=("NCHW", "OIHW", "NCHW"),
    )
    assert out.shape == (1, C_OUT, H, W)
    if not jnp.allclose(out, ref, atol=1e-2, rtol=1e-2):
        raise AssertionError("Pallas kernel mismatch vs reference conv")

    print("KERNEL_OK")
</pallas_src>

<mosaic_0001>
module attributes {stable_mosaic.version = 11 : i64} {
  func.func @relu_conv_kernel(%arg0: i32, %arg1: memref<192x256xf32, #tpu.memory_space<vmem>>, %arg2: memref<432x192xf32, #tpu.memory_space<vmem>>, %arg3: memref<48x256xf32, #tpu.memory_space<vmem>>) attributes {dimension_semantics = [#tpu.dimension_semantics<arbitrary>], iteration_bounds = array<i64: 1>, scalar_prefetch = 0 : i64, scratch_operands = 0 : i64, tpu.core_type = #tpu.core_type<tc>, window_params = [{pipeline_mode = #tpu.pipeline_mode<synchronous>, transform_indices = @transform_0, window_bounds = array<i64: 192, 256>}, {pipeline_mode = #tpu.pipeline_mode<synchronous>, transform_indices = @transform_1, window_bounds = array<i64: 432, 192>}, {pipeline_mode = #tpu.pipeline_mode<synchronous>, transform_indices = @transform_2, window_bounds = array<i64: 48, 256>}]} {
    %c0 = arith.constant 0 : index
    %c0_0 = arith.constant 0 : index
    %0 = vector.load %arg1[%c0, %c0_0] : memref<192x256xf32, #tpu.memory_space<vmem>>, vector<192x256xf32>
    %cst = arith.constant 0.000000e+00 : f32
    %1 = vector.broadcast %cst : f32 to vector<192x256xf32>
    %2 = arith.maximumf %0, %1 : vector<192x256xf32>
    %c0_1 = arith.constant 0 : index
    %c0_2 = arith.constant 0 : index
    %3 = vector.load %arg2[%c0_1, %c0_2] : memref<432x192xf32, #tpu.memory_space<vmem>>, vector<432x192xf32>
    %cst_3 = arith.constant dense<0.000000e+00> : vector<432x256xf32>
    %4 = tpu.matmul %3, %2, %cst_3 {dimension_numbers = #tpu.dot_dimension_numbers<[1], [0], [0], [1], [0, 0, 1, 1], [], []>} : vector<432x192xf32>, vector<192x256xf32>, vector<432x256xf32> -> vector<432x256xf32>
    %5 = vector.extract_strided_slice %4 {offsets = [0, 0], sizes = [48, 256], strides = [1, 1]} : vector<432x256xf32> to vector<48x256xf32>
    %6 = vector.extract_strided_slice %4 {offsets = [48, 0], sizes = [48, 256], strides = [1, 1]} : vector<432x256xf32> to vector<48x256xf32>
    %c255_i32 = arith.constant 255 : i32
    %7 = tpu.dynamic_rotate %6 by %c255_i32 dim 1 : vector<48x256xf32>, i32 -> vector<48x256xf32>
    %8 = arith.addf %5, %7 : vector<48x256xf32>
    %9 = vector.extract_strided_slice %4 {offsets = [96, 0], sizes = [48, 256], strides = [1, 1]} : vector<432x256xf32> to vector<48x256xf32>
    %c254_i32 = arith.constant 254 : i32
    %10 = tpu.dynamic_rotate %9 by %c254_i32 dim 1 : vector<48x256xf32>, i32 -> vector<48x256xf32>
    %11 = arith.addf %8, %10 : vector<48x256xf32>
    %12 = vector.extract_strided_slice %4 {offsets = [144, 0], sizes = [48, 256], strides = [1, 1]} : vector<432x256xf32> to vector<48x256xf32>
    %c240_i32 = arith.constant 240 : i32
    %13 = tpu.dynamic_rotate %12 by %c240_i32 dim 1 : vector<48x256xf32>, i32 -> vector<48x256xf32>
    %14 = arith.addf %11, %13 : vector<48x256xf32>
    %15 = vector.extract_strided_slice %4 {offsets = [192, 0], sizes = [48, 256], strides = [1, 1]} : vector<432x256xf32> to vector<48x256xf32>
    %c239_i32 = arith.constant 239 : i32
    %16 = tpu.dynamic_rotate %15 by %c239_i32 dim 1 : vector<48x256xf32>, i32 -> vector<48x256xf32>
    %17 = arith.addf %14, %16 : vector<48x256xf32>
    %18 = vector.extract_strided_slice %4 {offsets = [240, 0], sizes = [48, 256], strides = [1, 1]} : vector<432x256xf32> to vector<48x256xf32>
    %c238_i32 = arith.constant 238 : i32
    %19 = tpu.dynamic_rotate %18 by %c238_i32 dim 1 : vector<48x256xf32>, i32 -> vector<48x256xf32>
    %20 = arith.addf %17, %19 : vector<48x256xf32>
    %21 = vector.extract_strided_slice %4 {offsets = [288, 0], sizes = [48, 256], strides = [1, 1]} : vector<432x256xf32> to vector<48x256xf32>
    %c224_i32 = arith.constant 224 : i32
    %22 = tpu.dynamic_rotate %21 by %c224_i32 dim 1 : vector<48x256xf32>, i32 -> vector<48x256xf32>
    %23 = arith.addf %20, %22 : vector<48x256xf32>
    %24 = vector.extract_strided_slice %4 {offsets = [336, 0], sizes = [48, 256], strides = [1, 1]} : vector<432x256xf32> to vector<48x256xf32>
    %c223_i32 = arith.constant 223 : i32
    %25 = tpu.dynamic_rotate %24 by %c223_i32 dim 1 : vector<48x256xf32>, i32 -> vector<48x256xf32>
    %26 = arith.addf %23, %25 : vector<48x256xf32>
    %27 = vector.extract_strided_slice %4 {offsets = [384, 0], sizes = [48, 256], strides = [1, 1]} : vector<432x256xf32> to vector<48x256xf32>
    %c222_i32 = arith.constant 222 : i32
    %28 = tpu.dynamic_rotate %27 by %c222_i32 dim 1 : vector<48x256xf32>, i32 -> vector<48x256xf32>
    %29 = arith.addf %26, %28 : vector<48x256xf32>
    %c0_4 = arith.constant 0 : index
    %c0_5 = arith.constant 0 : index
    %30 = vector.load %arg3[%c0_4, %c0_5] : memref<48x256xf32, #tpu.memory_space<vmem>>, vector<48x256xf32>
    tpu.vector_store %arg3[%c0_4, %c0_5], %29 {strides = array<i32>} : memref<48x256xf32, #tpu.memory_space<vmem>>, vector<48x256xf32>,
    return
  }
  func.func @transform_0(%arg0: i32) -> (i32, i32) {
    %c0_i32 = arith.constant 0 : i32
    %c0_i32_0 = arith.constant 0 : i32
    %c0_i32_1 = arith.constant 0 : i32
    return %c0_i32, %c0_i32_0 : i32, i32
  }
  func.func @transform_1(%arg0: i32) -> (i32, i32) {
    %c0_i32 = arith.constant 0 : i32
    %c0_i32_0 = arith.constant 0 : i32
    %c0_i32_1 = arith.constant 0 : i32
    return %c0_i32, %c0_i32_0 : i32, i32
  }
  func.func @transform_2(%arg0: i32) -> (i32, i32) {
    %c0_i32 = arith.constant 0 : i32
    %c0_i32_0 = arith.constant 0 : i32
    %c0_i32_1 = arith.constant 0 : i32
    return %c0_i32, %c0_i32_0 : i32, i32
  }
}

</mosaic_0001>

<bundles_post_ra>
// kernel: relu_conv2d.1
= control target key start
LH: loop header
LB: loop body
LE: loop exit
PB: predicated region body
PF: predicated region fallthrough
CT: control target
= control target key end

     0   :  { %vm215_vm0 = vcmask 523264   ;;  %s1620_s27 = smov 127   ;;  %s1621_s24 = smov 126   ;;  %s2835_s0 = inlined_call_operand.vmem [shape: f32[192,256], index: 0, kind: input, shape index: {}]   ;;  %s2836_s1 = inlined_call_operand.vmem [shape: f32[432,192], index: 1, kind: input, shape index: {}]   ;;  %s2837_s2 = inlined_call_operand.vmem [shape: f32[48,256], index: 2, kind: output, shape index: {}]  }
   0x1   :  { %v41_v0 = vld [vmem:[%s2835_s0 + $0xf0] sm:$0xff]  ;;  %v42_v1 = vld [vmem:[%s2835_s0 + $0xf8] sm:$0xff]  ;;  %v39_v2 = vld [vmem:[%s2835_s0 + $0xe0] sm:$0xff]  ;;  %s1622_s20 = smov 112   ;;  %s1623_s16 = smov 111  }
   0x2   :  { %v89_v3 = vmax.f32 %v41_v0, 0.0  ;;  %v90_v4 = vmax.f32 %v42_v1, 0.0  ;;  %v87_v5 = vmax.f32 %v39_v2, 0.0  ;;  %v40_v6 = vld [vmem:[%s2835_s0 + $0xe8] sm:$0xff]  ;;  %v37_v7 = vld [vmem:[%s2835_s0 + $0xd0] sm:$0xff]  ;;  %v38_v8 = vld [vmem:[%s2835_s0 + $0xd8] sm:$0xff] }
   0x3   :  { %v88_v9 = vmax.f32 %v40_v6, 0.0  ;;  %v35_v10 = vld [vmem:[%s2835_s0 + $0xc0] sm:$0xff]  ;;  %v36_v11 = vld [vmem:[%s2835_s0 + $0xc8] sm:$0xff]  ;;  %v85_v12 = vmax.f32 %v37_v7, 0.0  ;;  %v86_v13 = vmax.f32 %v38_v8, 0.0  ;;  %v33_v14 = vld [vmem:[%s2835_s0 + $0xb0] sm:$0xff] }
   0x4   :  { %378 = vmatpush.msra.mxu0 %v89_v3  ;;  %736 = vmatpush.msra.mxu2 %v90_v4  ;;  %v34_v15 = vld [vmem:[%s2835_s0 + $0xb8] sm:$0xff]  ;;  %v83_v16 = vmax.f32 %v35_v10, 0.0  ;;  %v84_v17 = vmax.f32 %v36_v11, 0.0  ;;  %v57_v18 = vld [vmem:[%s2835_s0 + $0x170] sm:$0xff]  ;;  %v31_v19 = vld [vmem:[%s2835_s0 + $0xa0] sm:$0xff]  ;;  %v81_v23 = vmax.f32 %v33_v14, 0.0 }
   0x5   :  { %v32_v20 = vld [vmem:[%s2835_s0 + $0xa8] sm:$0xff]  ;;  %v105_v21 = vmax.f32 %v57_v18, 0.0  ;;  %v58_v22 = vld [vmem:[%s2835_s0 + $0x178] sm:$0xff]  ;;  %v82_v24 = vmax.f32 %v34_v15, 0.0  ;;  %v55_v26 = vld [vmem:[%s2835_s0 + $0x160] sm:$0xff]  ;;  %v79_v33 = vmax.f32 %v31_v19, 0.0 }
   0x6   :  { %379 = vmatpush.msra.mxu0 %v87_v5  ;;  %737 = vmatpush.msra.mxu2 %v88_v9  ;;  %v106_v25 = vmax.f32 %v58_v22, 0.0  ;;  %v56_v27 = vld [vmem:[%s2835_s0 + $0x168] sm:$0xff]  ;;  %v29_v28 = vld [vmem:[%s2835_s0 + $0x90] sm:$0xff]  ;;  %v30_v29 = vld [vmem:[%s2835_s0 + $0x98] sm:$0xff]  ;;  %v103_v30 = vmax.f32 %v55_v26, 0.0  ;;  %v80_v34 = vmax.f32 %v32_v20, 0.0 }
   0x7   :  { %565 = vmatpush.msra.mxu1 %v105_v21  ;;  %v104_v31 = vmax.f32 %v56_v27, 0.0  ;;  %v53_v32 = vld [vmem:[%s2835_s0 + $0x150] sm:$0xff]  ;;  %v54_v36 = vld [vmem:[%s2835_s0 + $0x158] sm:$0xff]  ;;  %v51_v37 = vld [vmem:[%s2835_s0 + $0x140] sm:$0xff]  ;;  %v77_v43 = vmax.f32 %v29_v28, 0.0  ;;  %v78_v44 = vmax.f32 %v30_v29, 0.0 }
   0x8   :  { %380 = vmatpush.msra.mxu0 %v85_v12  ;;  %738 = vmatpush.msra.mxu2 %v86_v13  ;;  %v101_v35 = vmax.f32 %v53_v32, 0.0  ;;  %v27_v38 = vld [vmem:[%s2835_s0 + $0x80] sm:$0xff]  ;;  %v28_v39 = vld [vmem:[%s2835_s0 + $0x88] sm:$0xff]  ;;  %v102_v40 = vmax.f32 %v54_v36, 0.0  ;;  %v99_v41 = vmax.f32 %v51_v37, 0.0  ;;  %v49_v45 = vld [vmem:[%s2835_s0 + $0x130] sm:$0xff] }
   0x9   :  { %923 = vmatpush.msra.mxu3 %v106_v25  ;;  %566 = vmatpush.msra.mxu1 %v103_v30  ;;  %v52_v42 = vld [vmem:[%s2835_s0 + $0x148] sm:$0xff]  ;;  %v50_v46 = vld [vmem:[%s2835_s0 + $0x138] sm:$0xff]  ;;  %v25_v47 = vld [vmem:[%s2835_s0 + $0x70] sm:$0xff]  ;;  %v97_v50 = vmax.f32 %v49_v45, 0.0  ;;  %v75_v52 = vmax.f32 %v27_v38, 0.0  ;;  %v76_v53 = vmax.f32 %v28_v39, 0.0 }
   0xa   :  { %381 = vmatpush.msra.mxu0 %v83_v16  ;;  %739 = vmatpush.msra.mxu2 %v84_v17  ;;  %v26_v48 = vld [vmem:[%s2835_s0 + $0x78] sm:$0xff]  ;;  %v100_v49 = vmax.f32 %v52_v42, 0.0  ;;  %v47_v51 = vld [vmem:[%s2835_s0 + $0x120] sm:$0xff]  ;;  %v48_v54 = vld [vmem:[%s2835_s0 + $0x128] sm:$0xff]  ;;  %v98_v58 = vmax.f32 %v50_v46, 0.0  ;;  %v73_v60 = vmax.f32 %v25_v47, 0.0 }
   0xb   :  { %924 = vmatpush.msra.mxu3 %v104_v31  ;;  %567 = vmatpush.msra.mxu1 %v101_v35  ;;  %v45_v55 = vld [vmem:[%s2835_s0 + $0x110] sm:$0xff]  ;;  %v23_v56 = vld [vmem:[%s2835_s0 + $0x60] sm:$0xff]  ;;  %v24_v57 = vld [vmem:[%s2835_s0 + $0x68] sm:$0xff]  ;;  %v95_v59 = vmax.f32 %v47_v51, 0.0  ;;  %v74_v61 = vmax.f32 %v26_v48, 0.0  ;;  %v96_v2 = vmax.f32 %v48_v54, 0.0 }
   0xc   :  { %382 = vmatpush.msra.mxu0 %v81_v23  ;;  %740 = vmatpush.msra.mxu2 %v82_v24  ;;  %v46_v62 = vld [vmem:[%s2835_s0 + $0x118] sm:$0xff]  ;;  %v43_v63 = vld [vmem:[%s2835_s0 + $0x100] sm:$0xff]  ;;  %v21_v0 = vld [vmem:[%s2835_s0 + $0x50] sm:$0xff]  ;;  %v93_v3 = vmax.f32 %v45_v55, 0.0  ;;  %v71_v4 = vmax.f32 %v23_v56, 0.0  ;;  %v72_v5 = vmax.f32 %v24_v57, 0.0 }
   0xd   :  { %925 = vmatpush.msra.mxu3 %v102_v40  ;;  %568 = vmatpush.msra.mxu1 %v99_v41  ;;  %v22_v1 = vld [vmem:[%s2835_s0 + $0x58] sm:$0xff]  ;;  %v44_v6 = vld [vmem:[%s2835_s0 + $0x108] sm:$0xff]  ;;  %v19_v7 = vld [vmem:[%s2835_s0 + $0x40] sm:$0xff]  ;;  %v94_v9 = vmax.f32 %v46_v62, 0.0  ;;  %v91_v10 = vmax.f32 %v43_v63, 0.0  ;;  %v69_v11 = vmax.f32 %v21_v0, 0.0 }
   0xe   :  { %383 = vmatpush.msra.mxu0 %v79_v33  ;;  %741 = vmatpush.msra.mxu2 %v80_v34  ;;  %v20_v8 = vld [vmem:[%s2835_s0 + $0x48] sm:$0xff]  ;;  %v70_v12 = vmax.f32 %v22_v1, 0.0  ;;  %v17_v13 = vld [vmem:[%s2835_s0 + $0x30] sm:$0xff]  ;;  %v18_v14 = vld [vmem:[%s2835_s0 + $0x38] sm:$0xff]  ;;  %v92_v15 = vmax.f32 %v44_v6, 0.0  ;;  %v67_v16 = vmax.f32 %v19_v7, 0.0 }
   0xf   :  { %926 = vmatpush.msra.mxu3 %v100_v49  ;;  %569 = vmatpush.msra.mxu1 %v97_v50  ;;  %v68_v17 = vmax.f32 %v20_v8, 0.0  ;;  %v108_v18 = vld [vmem:[%s2836_s1 + $0x8] sm:$0xff]  ;;  %v15_v19 = vld [vmem:[%s2835_s0 + $0x20] sm:$0xff]  ;;  %v65_v21 = vmax.f32 %v17_v13, 0.0  ;;  %v66_v22 = vmax.f32 %v18_v14, 0.0  ;;  %v13_v23 = vld [vmem:[%s2835_s0 + $0x10] sm:$0xff] }
  0x10   :  { %384 = vmatpush.msra.mxu0 %v77_v43  ;;  %742 = vmatpush.msra.mxu2 %v78_v44  ;;  %v16_v20 = vld [vmem:[%s2835_s0 + $0x28] sm:$0xff]  ;;  %v14_v24 = vld [vmem:[%s2835_s0 + $0x18] sm:$0xff]  ;;  %v63_v25 = vmax.f32 %v15_v19, 0.0  ;;  %v11_v27 = vld [vmem:[%s2835_s0] sm:$0xff]  ;;  %v61_v29 = vmax.f32 %v13_v23, 0.0  ;;  %s1624_s12 = smov 110  }
  0x11   :  { %927 = vmatpush.msra.mxu3 %v98_v58  ;;  %570 = vmatpush.msra.mxu1 %v95_v59  ;;  %v64_v26 = vmax.f32 %v16_v20, 0.0  ;;  %v12_v28 = vld [vmem:[%s2835_s0 + $0x8] sm:$0xff]  ;;  %v62_v30 = vmax.f32 %v14_v24, 0.0  ;;  %v59_v31 = vmax.f32 %v11_v27, 0.0  ;;  %v110_v33 = vld [vmem:[%s2836_s1 + $0x18] sm:$0xff]  ;;  %v107_v34 = vld [vmem:[%s2836_s1] sm:$0xff] }
  0x12   :  { %385 = vmatpush.msra.mxu0 %v75_v52  ;;  %743 = vmatpush.msra.mxu2 %v76_v53  ;;  %v60_v32 = vmax.f32 %v12_v28, 0.0  ;;  %v112_v35 = vld [vmem:[%s2836_s1 + $0x28] sm:$0xff]  ;;  %v109_v36 = vld [vmem:[%s2836_s1 + $0x10] sm:$0xff]  ;;  %v114_v37 = vld [vmem:[%s2836_s1 + $0x38] sm:$0xff]  ;;  %s1625_s8 = smov 96   ;;  %s1627_s11 = smov 94  }
  0x13   :  { %928 = vmatpush.msra.mxu3 %v96_v2  ;;  %571 = vmatpush.msra.mxu1 %v93_v3  ;;  %v111_v38 = vld [vmem:[%s2836_s1 + $0x20] sm:$0xff]  ;;  %v116_v39 = vld [vmem:[%s2836_s1 + $0x48] sm:$0xff]  ;;  %v113_v40 = vld [vmem:[%s2836_s1 + $0x30] sm:$0xff] }
  0x14   :  { %386 = vmatpush.msra.mxu0 %v73_v60  ;;  %744 = vmatpush.msra.mxu2 %v74_v61  ;;  %v118_v41 = vld [vmem:[%s2836_s1 + $0x58] sm:$0xff]  ;;  %v115_v42 = vld [vmem:[%s2836_s1 + $0x40] sm:$0xff]  ;;  %v120_v43 = vld [vmem:[%s2836_s1 + $0x68] sm:$0xff] }
  0x15   :  { %929 = vmatpush.msra.mxu3 %v94_v9  ;;  %572 = vmatpush.msra.mxu1 %v91_v10  ;;  %v117_v44 = vld [vmem:[%s2836_s1 + $0x50] sm:$0xff]  ;;  %v122_v45 = vld [vmem:[%s2836_s1 + $0x78] sm:$0xff]  ;;  %v119_v46 = vld [vmem:[%s2836_s1 + $0x60] sm:$0xff] }
  0x16   :  { %387 = vmatpush.msra.mxu0 %v71_v4  ;;  %745 = vmatpush.msra.mxu2 %v72_v5  ;;  %v124_v47 = vld [vmem:[%s2836_s1 + $0x88] sm:$0xff]  ;;  %v121_v48 = vld [vmem:[%s2836_s1 + $0x70] sm:$0xff]  ;;  %v126_v49 = vld [vmem:[%s2836_s1 + $0x98] sm:$0xff] }
  0x17   :  { %930 = vmatpush.msra.mxu3 %v92_v15  ;;  %1504 = vmatmul.msk.f32.vlgmr.msra.gmra.mxu1 %vm215_vm0, %v108_v18  ;;  %v123_v50 = vld [vmem:[%s2836_s1 + $0x80] sm:$0xff]  ;;  %v128_v51 = vld [vmem:[%s2836_s1 + $0xa8] sm:$0xff]  ;;  %v125_v52 = vld [vmem:[%s2836_s1 + $0x90] sm:$0xff] }
  0x18   :  { %388 = vmatpush.msra.mxu0 %v69_v11  ;;  %746 = vmatpush.msra.mxu2 %v70_v12  ;;  %v130_v53 = vld [vmem:[%s2836_s1 + $0xb8] sm:$0xff]  ;;  %v127_v54 = vld [vmem:[%s2836_s1 + $0xa0] sm:$0xff]  ;;  %v132_v55 = vld [vmem:[%s2836_s1 + $0xc8] sm:$0xff] }
  0x19   :  { %1558 = vmatmul.msk.f32.vlgmr.msra.gmra.mxu3 %vm215_vm0, %v108_v18  ;;  %v129_v56 = vld [vmem:[%s2836_s1 + $0xb0] sm:$0xff]  ;;  %v134_v57 = vld [vmem:[%s2836_s1 + $0xd8] sm:$0xff]  ;;  %v131_v58 = vld [vmem:[%s2836_s1 + $0xc0] sm:$0xff] }
  0x1a   :  { %389 = vmatpush.msra.mxu0 %v67_v16  ;;  %747 = vmatpush.msra.mxu2 %v68_v17  ;;  %v136_v59 = vld [vmem:[%s2836_s1 + $0xe8] sm:$0xff]  ;;  %v133_v60 = vld [vmem:[%s2836_s1 + $0xd0] sm:$0xff]  ;;  %v138_v61 = vld [vmem:[%s2836_s1 + $0xf8] sm:$0xff] }
  0x1b   :  { %v135_v62 = vld [vmem:[%s2836_s1 + $0xe0] sm:$0xff]  ;;  %v140_v0 = vld [vmem:[%s2836_s1 + $0x108] sm:$0xff]  ;;  %v137_v1 = vld [vmem:[%s2836_s1 + $0xf0] sm:$0xff] }
  0x1c   :  { %390 = vmatpush.msra.mxu0 %v65_v21  ;;  %748 = vmatpush.msra.mxu2 %v66_v22  ;;  %v142_v4 = vld [vmem:[%s2836_s1 + $0x118] sm:$0xff]  ;;  %v139_v6 = vld [vmem:[%s2836_s1 + $0x100] sm:$0xff]  ;;  %v144_v9 = vld [vmem:[%s2836_s1 + $0x128] sm:$0xff] }
  0x1d   :  { %v141_v13 = vld [vmem:[%s2836_s1 + $0x110] sm:$0xff]  ;;  %v146_v16 = vld [vmem:[%s2836_s1 + $0x138] sm:$0xff]  ;;  %v143_v20 = vld [vmem:[%s2836_s1 + $0x120] sm:$0xff] }
  0x1e   :  { %391 = vmatpush.msra.mxu0 %v63_v25  ;;  %749 = vmatpush.msra.mxu2 %v64_v26  ;;  %v148_v23 = vld [vmem:[%s2836_s1 + $0x148] sm:$0xff]  ;;  %v145_v27 = vld [vmem:[%s2836_s1 + $0x130] sm:$0xff] }
  0x1f   :  { %1505 = vmatmul.msk.f32.gmra.mxu1 %vm215_vm0, %v110_v33 }
  0x20   :  { %392 = vmatpush.msra.mxu0 %v61_v29  ;;  %750 = vmatpush.msra.mxu2 %v62_v30  ;;  %v150_v30 = vld [vmem:[%s2836_s1 + $0x158] sm:$0xff] }
  0x21   :  { %1559 = vmatmul.msk.f32.gmra.mxu3 %vm215_vm0, %v110_v33 }
  0x22   :  { %393 = vmatpush.msra.mxu0 %v59_v31  ;;  %751 = vmatpush.msra.mxu2 %v60_v32 }
  0x23   :  { %394 = vmatmul.f32.vlgmr.msra.gmra.mxu0 %v107_v34  ;;  %752 = vmatmul.f32.vlgmr.msra.gmra.mxu2 %v107_v34  ;;  %v147_v34 = vld [vmem:[%s2836_s1 + $0x140] sm:$0xff] }
  0x27   :  { %1506 = vmatmul.msk.f32.gmra.mxu1 %vm215_vm0, %v112_v35 }
  0x29   :  { %1560 = vmatmul.msk.f32.gmra.mxu3 %vm215_vm0, %v112_v35 }
  0x2b   :  { %397 = vmatmul.f32.gmra.mxu0 %v109_v36  ;;  %755 = vmatmul.f32.gmra.mxu2 %v109_v36 }
  0x2f   :  { %1507 = vmatmul.msk.f32.gmra.mxu1 %vm215_vm0, %v114_v37 }
  0x31   :  { %1561 = vmatmul.msk.f32.gmra.mxu3 %vm215_vm0, %v114_v37  ;;  %v152_v37 = vld [vmem:[%s2836_s1 + $0x168] sm:$0xff] }
  0x33   :  { %400 = vmatmul.f32.gmra.mxu0 %v111_v38  ;;  %758 = vmatmul.f32.gmra.mxu2 %v111_v38 }
  0x37   :  { %1508 = vmatmul.msk.f32.gmra.mxu1 %vm215_vm0, %v116_v39 }
  0x39   :  { %1562 = vmatmul.msk.f32.gmra.mxu3 %vm215_vm0, %v116_v39 }
  0x3b   :  { %403 = vmatmul.f32.gmra.mxu0 %v113_v40  ;;  %761 = vmatmul.f32.gmra.mxu2 %v113_v40 }
  0x3f   :  { %1509 = vmatmul.msk.f32.gmra.mxu1 %vm215_vm0, %v118_v41 }
  0x41   :  { %1563 = vmatmul.msk.f32.gmra.mxu3 %vm215_vm0, %v118_v41  ;;  %v149_v41 = vld [vmem:[%s2836_s1 + $0x150] sm:$0xff] }
  0x43   :  { %406 = vmatmul.f32.gmra.mxu0 %v115_v42  ;;  %764 = vmatmul.f32.gmra.mxu2 %v115_v42 }
  0x47   :  { %1510 = vmatmul.msk.f32.gmra.mxu1 %vm215_vm0, %v120_v43 }
  0x49   :  { %1564 = vmatmul.msk.f32.gmra.mxu3 %vm215_vm0, %v120_v43 }
  0x4b   :  { %409 = vmatmul.f32.gmra.mxu0 %v117_v44  ;;  %767 = vmatmul.f32.gmra.mxu2 %v117_v44  ;;  %v154_v44 = vld [vmem:[%s2836_s1 + $0x178] sm:$0xff] }
  0x4f   :  { %1511 = vmatmul.msk.f32.gmra.mxu1 %vm215_vm0, %v122_v45 }
  0x51   :  { %1565 = vmatmul.msk.f32.gmra.mxu3 %vm215_vm0, %v122_v45 }
  0x53   :  { %412 = vmatmul.f32.gmra.mxu0 %v119_v46  ;;  %770 = vmatmul.f32.gmra.mxu2 %v119_v46 }
  0x57   :  { %1512 = vmatmul.msk.f32.gmra.mxu1 %vm215_vm0, %v124_v47 }
  0x59   :  { %1566 = vmatmul.msk.f32.gmra.mxu3 %vm215_vm0, %v124_v47 }
  0x5b   :  { %415 = vmatmul.f32.gmra.mxu0 %v121_v48  ;;  %773 = vmatmul.f32.gmra.mxu2 %v121_v48  ;;  %v151_v48 = vld [vmem:[%s2836_s1 + $0x160] sm:$0xff] }
  0x5f   :  { %1513 = vmatmul.msk.f32.gmra.mxu1 %vm215_vm0, %v126_v49 }
  0x61   :  { %1567 = vmatmul.msk.f32.gmra.mxu3 %vm215_vm0, %v126_v49 }
  0x63   :  { %418 = vmatmul.f32.gmra.mxu0 %v123_v50  ;;  %776 = vmatmul.f32.gmra.mxu2 %v123_v50 }
  0x67   :  { %1514 = vmatmul.msk.f32.gmra.mxu1 %vm215_vm0, %v128_v51 }
  0x69   :  { %1568 = vmatmul.msk.f32.gmra.mxu3 %vm215_vm0, %v128_v51 }
  0x6b   :  { %421 = vmatmul.f32.gmra.mxu0 %v125_v52  ;;  %779 = vmatmul.f32.gmra.mxu2 %v125_v52  ;;  %v156_v52 = vld [vmem:[%s2836_s1 + $0x188] sm:$0xff] }
  0x6f   :  { %1515 = vmatmul.msk.f32.gmra.mxu1 %vm215_vm0, %v130_v53 }
  0x71   :  { %1569 = vmatmul.msk.f32.gmra.mxu3 %vm215_vm0, %v130_v53 }
  0x73   :  { %424 = vmatmul.f32.gmra.mxu0 %v127_v54  ;;  %782 = vmatmul.f32.gmra.mxu2 %v127_v54 }
  0x77   :  { %1516 = vmatmul.msk.f32.gmra.mxu1 %vm215_vm0, %v132_v55 }
  0x79   :  { %1570 = vmatmul.msk.f32.gmra.mxu3 %vm215_vm0, %v132_v55 }
  0x7b   :  { %427 = vmatmul.f32.gmra.mxu0 %v129_v56  ;;  %785 = vmatmul.f32.gmra.mxu2 %v129_v56  ;;  %v153_v56 = vld [vmem:[%s2836_s1 + $0x170] sm:$0xff] }
  0x7f   :  { %1517 = vmatmul.msk.f32.gmra.mxu1 %vm215_vm0, %v134_v57 }
  0x81   :  { %1571 = vmatmul.msk.f32.gmra.mxu3 %vm215_vm0, %v134_v57 }
  0x83   :  { %430 = vmatmul.f32.gmra.mxu0 %v131_v58  ;;  %788 = vmatmul.f32.gmra.mxu2 %v131_v58 }
  0x87   :  { %1518 = vmatmul.msk.f32.gmra.mxu1 %vm215_vm0, %v136_v59 }
  0x89   :  { %1572 = vmatmul.msk.f32.gmra.mxu3 %vm215_vm0, %v136_v59  ;;  %v158_v59 = vld [vmem:[%s2836_s1 + $0x198] sm:$0xff] }
  0x8b   :  { %433 = vmatmul.f32.gmra.mxu0 %v133_v60  ;;  %791 = vmatmul.f32.gmra.mxu2 %v133_v60 }
  0x8f   :  { %1519 = vmatmul.msk.f32.gmra.mxu1 %vm215_vm0, %v138_v61 }
  0x91   :  { %1573 = vmatmul.msk.f32.gmra.mxu3 %vm215_vm0, %v138_v61 }
  0x93   :  { %436 = vmatmul.f32.gmra.mxu0 %v135_v62  ;;  %794 = vmatmul.f32.gmra.mxu2 %v135_v62 }
  0x94   :  { %v1912_v63 = vpop.f32.mrf.mxu1 }
  0x97   :  { %1520 = vmatmul.msk.f32.gmra.mxu1 %vm215_vm0, %v140_v0 }
  0x99   :  { %1574 = vmatmul.msk.f32.gmra.mxu3 %vm215_vm0, %v140_v0  ;;  %v155_v0 = vld [vmem:[%s2836_s1 + $0x180] sm:$0xff] }
  0x9b   :  { %439 = vmatmul.f32.gmra.mxu0 %v137_v1  ;;  %797 = vmatmul.f32.gmra.mxu2 %v137_v1 }
  0x9c   :  { %v932_v2 = vpop.f32.mrf.mxu3  ;;  %v1922_v3 = vpop.f32.mrf.mxu1 }
  0x9f   :  { %1521 = vmatmul.msk.f32.gmra.mxu1 %vm215_vm0, %v142_v4 }
  0xa0   :  { %v1927_v5 = vpop.f32.mrf.mxu0 }
  0xa1   :  { %1575 = vmatmul.msk.f32.gmra.mxu3 %vm215_vm0, %v142_v4 }
  0xa3   :  { %442 = vmatmul.f32.gmra.mxu0 %v139_v6  ;;  %800 = vmatmul.f32.gmra.mxu2 %v139_v6 }
  0xa4   :  { %v1934_v8 = vpop.f32.mrf.mxu1  ;;  %v935_v11 = vpop.f32.mrf.mxu3 }
  0xa6   :  { %v753_v7 = vpop.f32.mrf.mxu2 }
  0xa7   :  { %v1939_v10 = vadd.f32 %v932_v2, %v753_v7  ;;  %1522 = vmatmul.msk.f32.gmra.mxu1 %vm215_vm0, %v144_v9 }
  0xa8   :  { %v1941_v12 = vpop.f32.mrf.mxu0 }
  0xa9   :  { %1576 = vmatmul.msk.f32.gmra.mxu3 %vm215_vm0, %v144_v9 }
  0xab   :  { %445 = vmatmul.f32.gmra.mxu0 %v141_v13  ;;  %803 = vmatmul.f32.gmra.mxu2 %v141_v13 }
  0xac   :  { %v1948_v15 = vpop.f32.mrf.mxu1  ;;  %v938_v18 = vpop.f32.mrf.mxu3 }
  0xae   :  { %v756_v14 = vpop.f32.mrf.mxu2 }
  0xaf   :  { %v1953_v17 = vadd.f32 %v935_v11, %v756_v14  ;;  %1523 = vmatmul.msk.f32.gmra.mxu1 %vm215_vm0, %v146_v16  ;;  %v160_v11 = vld [vmem:[%s2836_s1 + $0x1a8] sm:$0xff]  ;;  %v157_v14 = vld [vmem:[%s2836_s1 + $0x190] sm:$0xff] }
  0xb0   :  { %v1955_v19 = vpop.f32.mrf.mxu0 }
  0xb1   :  { %1577 = vmatmul.msk.f32.gmra.mxu3 %vm215_vm0, %v146_v16 }
  0xb3   :  { %448 = vmatmul.f32.gmra.mxu0 %v143_v20  ;;  %806 = vmatmul.f32.gmra.mxu2 %v143_v20 }
  0xb4   :  { %v1962_v22 = vpop.f32.mrf.mxu1  ;;  %v941_v25 = vpop.f32.mrf.mxu3 }
  0xb6   :  { %v759_v21 = vpop.f32.mrf.mxu2 }
  0xb7   :  { %v1967_v24 = vadd.f32 %v938_v18, %v759_v21  ;;  %1524 = vmatmul.msk.f32.gmra.mxu1 %vm215_vm0, %v148_v23 }
  0xb8   :  { %v1969_v26 = vpop.f32.mrf.mxu0 }
  0xb9   :  { %1578 = vmatmul.msk.f32.gmra.mxu3 %vm215_vm0, %v148_v23 }
  0xbb   :  { %451 = vmatmul.f32.gmra.mxu0 %v145_v27  ;;  %809 = vmatmul.f32.gmra.mxu2 %v145_v27 }
  0xbc   :  { %v1976_v29 = vpop.f32.mrf.mxu1  ;;  %v944_v32 = vpop.f32.mrf.mxu3 }
  0xbe   :  { %v762_v28 = vpop.f32.mrf.mxu2 }
  0xbf   :  { %v1981_v31 = vadd.f32 %v941_v25, %v762_v28  ;;  %1525 = vmatmul.msk.f32.gmra.mxu1 %vm215_vm0, %v150_v30  ;;  %v162_v25 = vld [vmem:[%s2836_s1 + $0x1b8] sm:$0xff]  ;;  %v159_v28 = vld [vmem:[%s2836_s1 + $0x1a0] sm:$0xff] }
  0xc0   :  { %v1983_v33 = vpop.f32.mrf.mxu0 }
  0xc1   :  { %1579 = vmatmul.msk.f32.gmra.mxu3 %vm215_vm0, %v150_v30 }
  0xc3   :  { %454 = vmatmul.f32.gmra.mxu0 %v147_v34  ;;  %812 = vmatmul.f32.gmra.mxu2 %v147_v34 }
  0xc4   :  { %v592_v36 = vpop.f32.mrf.mxu1  ;;  %v947_v39 = vpop.f32.mrf.mxu3 }
  0xc6   :  { %v765_v35 = vpop.f32.mrf.mxu2 }
  0xc7   :  { %v1993_v38 = vadd.f32 %v944_v32, %v765_v35  ;;  %1526 = vmatmul.msk.f32.gmra.mxu1 %vm215_vm0, %v152_v37 }
  0xc8   :  { %v1995_v40 = vpop.f32.mrf.mxu0 }
  0xc9   :  { %1580 = vmatmul.msk.f32.gmra.mxu3 %vm215_vm0, %v152_v37  ;;  %v164_v37 = vld [vmem:[%s2836_s1 + $0x1c8] sm:$0xff] }
  0xcb   :  { %457 = vmatmul.f32.gmra.mxu0 %v149_v41  ;;  %815 = vmatmul.f32.gmra.mxu2 %v149_v41  ;;  %v161_v41 = vld [vmem:[%s2836_s1 + $0x1b0] sm:$0xff] }
  0xcc   :  { %v595_v43 = vpop.f32.mrf.mxu1  ;;  %v950_v46 = vpop.f32.mrf.mxu3 }
  0xce   :  { %v768_v42 = vpop.f32.mrf.mxu2 }
  0xcf   :  { %v2005_v45 = vadd.f32 %v947_v39, %v768_v42  ;;  %1527 = vmatmul.msk.f32.gmra.mxu1 %vm215_vm0, %v154_v44 }
  0xd0   :  { %v413_v47 = vpop.f32.mrf.mxu0 }
  0xd1   :  { %v593_v49 = vadd.f32 %v592_v36, %v413_v47  ;;  %1581 = vmatmul.msk.f32.gmra.mxu3 %vm215_vm0, %v154_v44 }
  0xd3   :  { %460 = vmatmul.f32.gmra.mxu0 %v151_v48  ;;  %1094 = vrot.lane.b32.xlu0 %v593_v49, %s1620_s27 }
  0xd4   :  { %818 = vmatmul.f32.gmra.mxu2 %v151_v48  ;;  %v598_v51 = vpop.f32.mrf.mxu1  ;;  %v953_v54 = vpop.f32.mrf.mxu3  ;;  %v166_v48 = vld [vmem:[%s2836_s1 + $0x1d8] sm:$0xff] }
  0xd6   :  { %v771_v50 = vpop.f32.mrf.mxu2 }
  0xd7   :  { %v951_v53 = vadd.f32 %v950_v46, %v771_v50  ;;  %1528 = vmatmul.msk.f32.gmra.mxu1 %vm215_vm0, %v156_v52  ;;  %v163_v50 = vld [vmem:[%s2836_s1 + $0x1c0] sm:$0xff] }
  0xd8   :  { %v416_v55 = vpop.f32.mrf.mxu0 }
  0xd9   :  { %1582 = vmatmul.msk.f32.gmra.mxu3 %vm215_vm0, %v156_v52  ;;  %v596_v1 = vadd.f32 %v595_v43, %v416_v55  ;;  %v168_v55 = vld [vmem:[%s2836_s1 + $0x1e8] sm:$0xff] }
  0xdb   :  { %463 = vmatmul.f32.gmra.mxu0 %v153_v56  ;;  %1106 = vrot.lane.b32.xlu0 %v951_v53, %s1620_s27 }
  0xdc   :  { %821 = vmatmul.f32.gmra.mxu2 %v153_v56  ;;  %v601_v58 = vpop.f32.mrf.mxu1  ;;  %v956_v61 = vpop.f32.mrf.mxu3 }
  0xde   :  { %v774_v57 = vpop.f32.mrf.mxu2 }
  0xdf   :  { %v954_v60 = vadd.f32 %v953_v54, %v774_v57  ;;  %1529 = vmatmul.msk.f32.gmra.mxu1 %vm215_vm0, %v158_v59 }
  0xe0   :  { %v419_v62 = vpop.f32.mrf.mxu0 }
  0xe1   :  { %1108 = vrot.lane.b32.xlu1 %v954_v60, %s1620_s27  ;;  %1583 = vmatmul.msk.f32.gmra.mxu3 %vm215_vm0, %v158_v59  ;;  %v599_v6 = vadd.f32 %v598_v51, %v419_v62 }
  0xe3   :  { %466 = vmatmul.f32.gmra.mxu0 %v155_v0  ;;  %1096 = vrot.lane.b32.xlu0 %v596_v1, %s1620_s27  ;;  %v170_v1 = vld [vmem:[%s2836_s1 + $0x1f8] sm:$0xff] }
  0xe4   :  { %824 = vmatmul.f32.gmra.mxu2 %v155_v0  ;;  %v604_v4 = vpop.f32.mrf.mxu1  ;;  %v959_v9 = vpop.f32.mrf.mxu3 }
  0xe6   :  { %v777_v2 = vpop.f32.mrf.mxu2 }
  0xe7   :  { %v957_v7 = vadd.f32 %v956_v61, %v777_v2  ;;  %1530 = vmatmul.msk.f32.gmra.mxu1 %vm215_vm0, %v160_v11 }
  0xe8   :  { %v422_v13 = vpop.f32.mrf.mxu0 }
  0xe9   :  { %1098 = vrot.lane.b32.xlu1 %v599_v6, %s1620_s27  ;;  %1110 = vrot.lane.b32.xlu2 %v957_v7, %s1620_s27  ;;  %v602_v20 = vadd.f32 %v601_v58, %v422_v13  ;;  %v165_v58 = vld [vmem:[%s2836_s1 + $0x1d0] sm:$0xff]  ;;  %v172_v13 = vld [vmem:[%s2836_s1 + $0x208] sm:$0xff] }
  0xea   :  { %1584 = vmatmul.msk.f32.gmra.mxu3 %vm215_vm0, %v160_v11 }
  0xeb   :  { %469 = vmatmul.f32.gmra.mxu0 %v157_v14 }
  0xec   :  { %827 = vmatmul.f32.gmra.mxu2 %v157_v14  ;;  %v607_v18 = vpop.f32.mrf.mxu1  ;;  %v962_v23 = vpop.f32.mrf.mxu3 }
  0xee   :  { %v780_v16 = vpop.f32.mrf.mxu2 }
  0xef   :  { %v960_v21 = vadd.f32 %v959_v9, %v780_v16  ;;  %1531 = vmatmul.msk.f32.gmra.mxu1 %vm215_vm0, %v162_v25 }
  0xf0   :  { %v425_v27 = vpop.f32.mrf.mxu0 }
  0xf1   :  { %v605_v30 = vadd.f32 %v604_v4, %v425_v27  ;;  %1112 = vrot.lane.b32.xlu0 %v960_v21, %s1620_s27  ;;  %1100 = vrot.lane.b32.xlu1 %v602_v20, %s1620_s27  ;;  %v167_v4 = vld [vmem:[%s2836_s1 + $0x1e0] sm:$0xff] }
  0xf2   :  { %1585 = vmatmul.msk.f32.gmra.mxu3 %vm215_vm0, %v162_v25 }
  0xf3   :  { %472 = vmatmul.f32.gmra.mxu0 %v159_v28  ;;  %1102 = vrot.lane.b32.xlu2 %v605_v30, %s1620_s27 }
  0xf4   :  { %830 = vmatmul.f32.gmra.mxu2 %v159_v28  ;;  %v610_v34 = vpop.f32.mrf.mxu1  ;;  %v965_v36 = vpop.f32.mrf.mxu3  ;;  %v174_v28 = vld [vmem:[%s2836_s1 + $0x218] sm:$0xff] }
  0xf6   :  { %v783_v32 = vpop.f32.mrf.mxu2 }
  0xf7   :  { %v963_v35 = vadd.f32 %v962_v23, %v783_v32  ;;  %1532 = vmatmul.msk.f32.gmra.mxu1 %vm215_vm0, %v164_v37  ;;  %v171_v32 = vld [vmem:[%s2836_s1 + $0x200] sm:$0xff] }
  0xf8   :  { %v428_v39 = vpop.f32.mrf.mxu0 }
  0xf9   :  { %v608_v42 = vadd.f32 %v607_v18, %v428_v39  ;;  %1114 = vrot.lane.b32.xlu1 %v963_v35, %s1620_s27  ;;  %v169_v18 = vld [vmem:[%s2836_s1 + $0x1f0] sm:$0xff]  ;;  %v176_v39 = vld [vmem:[%s2836_s1 + $0x228] sm:$0xff] }
  0xfa   :  { %1586 = vmatmul.msk.f32.gmra.mxu3 %vm215_vm0, %v164_v37 }
  0xfb   :  { %475 = vmatmul.f32.gmra.mxu0 %v161_v41  ;;  %1104 = vrot.lane.b32.xlu2 %v608_v42, %s1620_s27 }
  0xfc   :  { %833 = vmatmul.f32.gmra.mxu2 %v161_v41  ;;  %v613_v44 = vpop.f32.mrf.mxu1  ;;  %v968_v47 = vpop.f32.mrf.mxu3 }
  0xfe   :  { %v786_v43 = vpop.f32.mrf.mxu2 }
  0xff   :  { %v966_v46 = vadd.f32 %v965_v36, %v786_v43  ;;  %1533 = vmatmul.msk.f32.gmra.mxu1 %vm215_vm0, %v166_v48  ;;  %v173_v43 = vld [vmem:[%s2836_s1 + $0x210] sm:$0xff] }
 0x100   :  { %v431_v49 = vpop.f32.mrf.mxu0 }
 0x101   :  { %v611_v51 = vadd.f32 %v610_v34, %v431_v49 }
 0x102   :  { %1587 = vmatmul.msk.f32.gmra.mxu3 %vm215_vm0, %v166_v48 }
 0x103   :  { %478 = vmatmul.f32.gmra.mxu0 %v163_v50  ;;  %1116 = vrot.lane.b32.xlu2 %v966_v46, %s1620_s27 }
 0x104   :  { %1145 = vrot.lane.b32.xlu0 %v611_v51, %s1621_s24  ;;  %836 = vmatmul.f32.gmra.mxu2 %v163_v50  ;;  %v616_v53 = vpop.f32.mrf.mxu1  ;;  %v971_v54 = vpop.f32.mrf.mxu3  ;;  %v178_v50 = vld [vmem:[%s2836_s1 + $0x238] sm:$0xff] }
 0x106   :  { %v789_v52 = vpop.f32.mrf.mxu2 }
 0x107   :  { %v969_v57 = vadd.f32 %v968_v47, %v789_v52  ;;  %1534 = vmatmul.msk.f32.gmra.mxu1 %vm215_vm0, %v168_v55  ;;  %v175_v52 = vld [vmem:[%s2836_s1 + $0x220] sm:$0xff] }
 0x108   :  { %v434_v56 = vpop.f32.mrf.mxu0 }
 0x109   :  { %v614_v59 = vadd.f32 %v613_v44, %v434_v56 }
 0x10a   :  { %1588 = vmatmul.msk.f32.gmra.mxu3 %vm215_vm0, %v168_v55 }
 0x10b   :  { %481 = vmatmul.f32.gmra.mxu0 %v165_v58  ;;  %1147 = vrot.lane.b32.xlu1 %v614_v59, %s1621_s24 }
 0x10c   :  { %1157 = vrot.lane.b32.xlu0 %v969_v57, %s1621_s24  ;;  %839 = vmatmul.f32.gmra.mxu2 %v165_v58  ;;  %v619_v61 = vpop.f32.mrf.mxu1  ;;  %v974_v0 = vpop.f32.mrf.mxu3  ;;  %v180_v57 = vld [vmem:[%s2836_s1 + $0x248] sm:$0xff] }
 0x10e   :  { %v792_v60 = vpop.f32.mrf.mxu2 }
 0x10f   :  { %v972_v62 = vadd.f32 %v971_v54, %v792_v60  ;;  %1535 = vmatmul.msk.f32.gmra.mxu1 %vm215_vm0, %v170_v1  ;;  %v177_v60 = vld [vmem:[%s2836_s1 + $0x230] sm:$0xff] }
 0x110   :  { %v437_v2 = vpop.f32.mrf.mxu0 }
 0x111   :  { %v617_v6 = vadd.f32 %v616_v53, %v437_v2 }
 0x112   :  { %1589 = vmatmul.msk.f32.gmra.mxu3 %vm215_vm0, %v170_v1 }
 0x113   :  { %484 = vmatmul.f32.gmra.mxu0 %v167_v4  ;;  %1159 = vrot.lane.b32.xlu1 %v972_v62, %s1621_s24 }
 0x114   :  { %1149 = vrot.lane.b32.xlu2 %v617_v6, %s1621_s24  ;;  %842 = vmatmul.f32.gmra.mxu2 %v167_v4  ;;  %v622_v9 = vpop.f32.mrf.mxu1  ;;  %v977_v11 = vpop.f32.mrf.mxu3  ;;  %v182_v4 = vld [vmem:[%s2836_s1 + $0x258] sm:$0xff] }
 0x116   :  { %v795_v7 = vpop.f32.mrf.mxu2 }
 0x117   :  { %v975_v16 = vadd.f32 %v974_v0, %v795_v7  ;;  %1536 = vmatmul.msk.f32.gmra.mxu1 %vm215_vm0, %v172_v13  ;;  %v179_v7 = vld [vmem:[%s2836_s1 + $0x240] sm:$0xff] }
 0x118   :  { %v440_v14 = vpop.f32.mrf.mxu0 }
 0x119   :  { %v620_v20 = vadd.f32 %v619_v61, %v440_v14 }
 0x11a   :  { %1590 = vmatmul.msk.f32.gmra.mxu3 %vm215_vm0, %v172_v13  ;;  %v1118_v13 = vlaneseq }
 0x11b   :  { %487 = vmatmul.f32.gmra.mxu0 %v169_v18  ;;  %1151 = vrot.lane.b32.xlu0 %v620_v20, %s1621_s24 }
 0x11c   :  { %1161 = vrot.lane.b32.xlu2 %v975_v16, %s1621_s24  ;;  %845 = vmatmul.f32.gmra.mxu2 %v169_v18  ;;  %v625_v23 = vpop.f32.mrf.mxu1  ;;  %v980_v27 = vpop.f32.mrf.mxu3  ;;  %v2155_v20 = vand.u32 127, %v1118_v13 }
 0x11e   :  { %v798_v21 = vpop.f32.mrf.mxu2  ;;  %vm1120_vm1 = vcmp.lt.s32.totalorder %v2155_v20, 127  ;;  %vm1169_vm2 = vcmp.lt.s32.totalorder %v2155_v20, 126  ;;  %vm1218_vm3 = vcmp.lt.s32.totalorder %v2155_v20, 112  ;;  %vm1267_vm4 = vcmp.lt.s32.totalorder %v2155_v20, 111 }
 0x11f   :  { %v978_v25 = vadd.f32 %v977_v11, %v798_v21  ;;  %1537 = vmatmul.msk.f32.gmra.mxu1 %vm215_vm0, %v174_v28  ;;  %vm1316_vm5 = vcmp.lt.s32.totalorder %v2155_v20, 110  ;;  %vm1365_vm6 = vcmp.lt.s32.totalorder %v2155_v20, 96  ;;  %vm1414_vm7 = vcmp.lt.s32.totalorder %v2155_v20, 95 }
 0x120   :  { %v443_v30 = vpop.f32.mrf.mxu0  ;;  %vm1463_vm8 = vcmp.lt.s32.totalorder %v2155_v20, 94 }
 0x121   :  { %v623_v34 = vadd.f32 %v622_v9, %v443_v30 }
 0x122   :  { %1591 = vmatmul.msk.f32.gmra.mxu3 %vm215_vm0, %v174_v28  ;;  %v181_v28 = vld [vmem:[%s2836_s1 + $0x250] sm:$0xff] }
 0x123   :  { %490 = vmatmul.f32.gmra.mxu0 %v171_v32  ;;  %1163 = vrot.lane.b32.xlu0 %v978_v25, %s1621_s24 }
 0x124   :  { %1153 = vrot.lane.b32.xlu1 %v623_v34, %s1621_s24  ;;  %848 = vmatmul.f32.gmra.mxu2 %v171_v32  ;;  %v628_v36 = vpop.f32.mrf.mxu1  ;;  %v983_v37 = vpop.f32.mrf.mxu3  ;;  %v575_v32 = vadd.f32 %v1912_v63, %v1927_v5  ;;  %v186_v5 = vld [vmem:[%s2836_s1 + $0x278] sm:$0xff] }
 0x126   :  { %v801_v35 = vpop.f32.mrf.mxu2 }
 0x127   :  { %v981_v42 = vadd.f32 %v980_v27, %v801_v35  ;;  %1538 = vmatmul.msk.f32.gmra.mxu1 %vm215_vm0, %v176_v39 }
 0x128   :  { %v446_v41 = vpop.f32.mrf.mxu0 }
 0x129   :  { %v626_v44 = vadd.f32 %v625_v23, %v446_v41  ;;  %v184_v23 = vld [vmem:[%s2836_s1 + $0x268] sm:$0xff] }
 0x12a   :  { %1592 = vmatmul.msk.f32.gmra.mxu3 %vm215_vm0, %v176_v39 }
 0x12b   :  { %493 = vmatmul.f32.gmra.mxu0 %v173_v43  ;;  %1155 = vrot.lane.b32.xlu2 %v626_v44, %s1621_s24 }
 0x12c   :  { %1165 = vrot.lane.b32.xlu1 %v981_v42, %s1621_s24  ;;  %851 = vmatmul.f32.gmra.mxu2 %v173_v43  ;;  %v631_v47 = vpop.f32.mrf.mxu1  ;;  %v986_v49 = vpop.f32.mrf.mxu3 }
 0x12e   :  { %v804_v46 = vpop.f32.mrf.mxu2 }
 0x12f   :  { %v984_v48 = vadd.f32 %v983_v37, %v804_v46  ;;  %1539 = vmatmul.msk.f32.gmra.mxu1 %vm215_vm0, %v178_v50 }
 0x130   :  { %v449_v51 = vpop.f32.mrf.mxu0 }
 0x131   :  { %v629_v53 = vadd.f32 %v628_v36, %v449_v51 }
 0x132   :  { %1593 = vmatmul.msk.f32.gmra.mxu3 %vm215_vm0, %v178_v50 }
 0x133   :  { %496 = vmatmul.f32.gmra.mxu0 %v175_v52  ;;  %1167 = vrot.lane.b32.xlu2 %v984_v48, %s1621_s24 }
 0x134   :  { %1194 = vrot.lane.b32.xlu0 %v629_v53, %s1622_s20  ;;  %854 = vmatmul.f32.gmra.mxu2 %v175_v52  ;;  %v634_v55 = vpop.f32.mrf.mxu1  ;;  %v989_v56 = vpop.f32.mrf.mxu3 }
 0x136   :  { %v807_v54 = vpop.f32.mrf.mxu2 }
 0x137   :  { %v987_v59 = vadd.f32 %v986_v49, %v807_v54  ;;  %1540 = vmatmul.msk.f32.gmra.mxu1 %vm215_vm0, %v180_v57 }
 0x138   :  { %v452_v58 = vpop.f32.mrf.mxu0 }
 0x139   :  { %v632_v61 = vadd.f32 %v631_v47, %v452_v58  ;;  %v183_v47 = vld [vmem:[%s2836_s1 + $0x260] sm:$0xff] }
 0x13a   :  { %1594 = vmatmul.msk.f32.gmra.mxu3 %vm215_vm0, %v180_v57 }
 0x13b   :  { %499 = vmatmul.f32.gmra.mxu0 %v177_v60  ;;  %1196 = vrot.lane.b32.xlu1 %v632_v61, %s1622_s20 }
 0x13c   :  { %1206 = vrot.lane.b32.xlu0 %v987_v59, %s1622_s20  ;;  %857 = vmatmul.f32.gmra.mxu2 %v177_v60  ;;  %v637_v0 = vpop.f32.mrf.mxu1  ;;  %v992_v2 = vpop.f32.mrf.mxu3  ;;  %v185_v60 = vld [vmem:[%s2836_s1 + $0x270] sm:$0xff] }
 0x13e   :  { %v810_v62 = vpop.f32.mrf.mxu2 }
 0x13f   :  { %v990_v1 = vadd.f32 %v989_v56, %v810_v62  ;;  %1541 = vmatmul.msk.f32.gmra.mxu1 %vm215_vm0, %v182_v4  ;;  %v581_v62 = vadd.f32 %v1934_v8, %v1955_v19 }
 0x140   :  { %v455_v6 = vpop.f32.mrf.mxu0 }
 0x141   :  { %v635_v9 = vadd.f32 %v634_v55, %v455_v6 }
 0x142   :  { %1595 = vmatmul.msk.f32.gmra.mxu3 %vm215_vm0, %v182_v4 }
 0x143   :  { %502 = vmatmul.f32.gmra.mxu0 %v179_v7  ;;  %1208 = vrot.lane.b32.xlu1 %v990_v1, %s1622_s20  ;;  %v2151_v11 = vpop.permute.xlu2 %1110 }
 0x144   :  { %1198 = vrot.lane.b32.xlu2 %v635_v9, %s1622_s20  ;;  %860 = vmatmul.f32.gmra.mxu2 %v179_v7  ;;  %v640_v18 = vpop.f32.mrf.mxu1  ;;  %v995_v21 = vpop.f32.mrf.mxu3 }
 0x145   :  { %v1095_v14 = vpop.permute.xlu0 %1094 }
 0x146   :  { %v813_v16 = vpop.f32.mrf.mxu2 }
 0x147   :  { %v993_v27 = vadd.f32 %v992_v2, %v813_v16  ;;  %1542 = vmatmul.msk.f32.gmra.mxu1 %vm215_vm0, %v184_v23  ;;  %v590_v2 = vadd.f32 %v1976_v29, %v1995_v40 }
 0x148   :  { %v458_v25 = vpop.f32.mrf.mxu0 }
 0x149   :  { %v638_v30 = vadd.f32 %v637_v0, %v458_v25 }
 0x14a   :  { %1596 = vmatmul.msk.f32.gmra.mxu3 %vm215_vm0, %v184_v23  ;;  %v584_v23 = vadd.f32 %v1948_v15, %v1969_v26 }
 0x14b   :  { %505 = vmatmul.f32.gmra.mxu0 %v181_v28  ;;  %1200 = vrot.lane.b32.xlu0 %v638_v30, %s1622_s20 }
 0x14c   :  { %1210 = vrot.lane.b32.xlu2 %v993_v27, %s1622_s20  ;;  %863 = vmatmul.f32.gmra.mxu2 %v181_v28  ;;  %v643_v41 = vpop.f32.mrf.mxu1  ;;  %v998_v63 = vpop.f32.mrf.mxu3 }
 0x14d   :  { %v1107_v34 = vpop.permute.xlu0 %1106  ;;  %v2169_v35 = vpop.permute.xlu2 %1102 }
 0x14e   :  { %v1121_v36 = vsel %vm1120_vm1, %v1095_v14, %v1107_v34  ;;  %v1127_v37 = vsel %vm1120_vm1, %v1107_v34, %v1095_v14  ;;  %v816_v39 = vpop.f32.mrf.mxu2  ;;  %v192_v34 = vld [vmem:[%s2836_s1 + $0x2a8] sm:$0xff] }
 0x14f   :  { %v2176_v42 = vadd.f32 %v1121_v36, %v575_v32  ;;  %v2179_v43 = vadd.f32 %v1127_v37, %v1939_v10  ;;  %v996_v44 = vadd.f32 %v995_v21, %v816_v39  ;;  %1543 = vmatmul.msk.f32.gmra.mxu1 %vm215_vm0, %v186_v5  ;;  %v578_v10 = vadd.f32 %v1922_v3, %v1941_v12  ;;  %v188_v3 = vld [vmem:[%s2836_s1 + $0x288] sm:$0xff]  ;;  %v189_v39 = vld [vmem:[%s2836_s1 + $0x290] sm:$0xff] }
 0x150   :  { %v461_v46 = vpop.f32.mrf.mxu0 }
 0x151   :  { %v641_v48 = vadd.f32 %v640_v18, %v461_v46  ;;  %v187_v18 = vld [vmem:[%s2836_s1 + $0x280] sm:$0xff] }
 0x152   :  { %1597 = vmatmul.msk.f32.gmra.mxu3 %vm215_vm0, %v186_v5 }
 0x153   :  { %v1109_v49 = vpop.permute.xlu1 %1108  ;;  %508 = vmatmul.f32.gmra.mxu0 %v183_v47  ;;  %1212 = vrot.lane.b32.xlu0 %v996_v44, %s1622_s20 }
 0x154   :  { %1202 = vrot.lane.b32.xlu1 %v641_v48, %s1622_s20  ;;  %866 = vmatmul.f32.gmra.mxu2 %v183_v47  ;;  %v646_v54 = vpop.f32.mrf.mxu1  ;;  %v1001_v58 = vpop.f32.mrf.mxu3 }
 0x155   :  { %v1097_v50 = vpop.permute.xlu0 %1096  ;;  %v1105_v51 = vpop.permute.xlu2 %1104 }
 0x156   :  { %v1122_v52 = vsel %vm1120_vm1, %v1097_v50, %v1109_v49  ;;  %v1128_v53 = vsel %vm1120_vm1, %v1109_v49, %v1097_v50 }
 0x157   :  { %v2197_v55 = vadd.f32 %v1122_v52, %v578_v10  ;;  %v2200_v56 = vadd.f32 %v1128_v53, %v1953_v17  ;;  %v819_v57 = vpop.f32.mrf.mxu2  ;;  %1544 = vmatmul.msk.f32.gmra.mxu1 %vm215_vm0, %v188_v3  ;;  %v194_v10 = vld [vmem:[%s2836_s1 + $0x2b8] sm:$0xff] }
 0x158   :  { %v464_v12 = vpop.f32.mrf.mxu0  ;;  %v999_v59 = vadd.f32 %v998_v63, %v819_v57 }
 0x159   :  { %v644_v61 = vadd.f32 %v643_v41, %v464_v12 }
 0x15a   :  { %1598 = vmatmul.msk.f32.gmra.mxu3 %vm215_vm0, %v188_v3 }
 0x15b   :  { %v1099_v17 = vpop.permute.xlu1 %1098  ;;  %511 = vmatmul.f32.gmra.mxu0 %v185_v60  ;;  %1204 = vrot.lane.b32.xlu2 %v644_v61, %s1622_s20 }
 0x15c   :  { %v1123_v0 = vsel %vm1120_vm1, %v1099_v17, %v2151_v11  ;;  %v1129_v1 = vsel %vm1120_vm1, %v2151_v11, %v1099_v17  ;;  %1214 = vrot.lane.b32.xlu1 %v999_v59, %s1622_s20  ;;  %869 = vmatmul.f32.gmra.mxu2 %v185_v60  ;;  %v649_v9 = vpop.f32.mrf.mxu1  ;;  %v1004_v40 = vpop.f32.mrf.mxu3  ;;  %v196_v59 = vld [vmem:[%s2836_s1 + $0x2c8] sm:$0xff] }
 0x15d   :  { %v2221_v4 = vadd.f32 %v1123_v0, %v581_v62  ;;  %v2224_v8 = vadd.f32 %v1129_v1, %v1967_v24  ;;  %v1117_v19 = vpop.permute.xlu2 %1116  ;;  %v190_v24 = vld [vmem:[%s2836_s1 + $0x298] sm:$0xff]  ;;  %v193_v0 = vld [vmem:[%s2836_s1 + $0x2b0] sm:$0xff] }
 0x15e   :  { %v1126_v6 = vsel %vm1120_vm1, %v1105_v51, %v1117_v19  ;;  %v1132_v7 = vsel %vm1120_vm1, %v1117_v19, %v1105_v51 }
 0x15f   :  { %v2231_v11 = vadd.f32 %v1126_v6, %v590_v2  ;;  %v2234_v13 = vadd.f32 %v1132_v7, %v2005_v45  ;;  %v822_v29 = vpop.f32.mrf.mxu2  ;;  %1545 = vmatmul.msk.f32.gmra.mxu1 %vm215_vm0, %v190_v24 }
 0x160   :  { %v467_v14 = vpop.f32.mrf.mxu0  ;;  %v1002_v16 = vadd.f32 %v1001_v58, %v822_v29  ;;  %v198_v29 = vld [vmem:[%s2836_s1 + $0x2d8] sm:$0xff] }
 0x161   :  { %v647_v21 = vadd.f32 %v646_v54, %v467_v14 }
 0x162   :  { %1599 = vmatmul.msk.f32.gmra.mxu3 %vm215_vm0, %v190_v24 }
 0x163   :  { %v1113_v45 = vpop.permute.xlu0 %1112  ;;  %v1101_v25 = vpop.permute.xlu1 %1100  ;;  %514 = vmatmul.f32.gmra.mxu0 %v187_v18  ;;  %1216 = vrot.lane.b32.xlu2 %v1002_v16, %s1622_s20 }
 0x164   :  { %v1124_v27 = vsel %vm1120_vm1, %v1101_v25, %v1113_v45  ;;  %v1130_v28 = vsel %vm1120_vm1, %v1113_v45, %v1101_v25  ;;  %1243 = vrot.lane.b32.xlu0 %v647_v21, %s1623_s16  ;;  %872 = vmatmul.f32.gmra.mxu2 %v187_v18  ;;  %v652_v26 = vpop.f32.mrf.mxu1  ;;  %v1007_v41 = vpop.f32.mrf.mxu3  ;;  %v195_v18 = vld [vmem:[%s2836_s1 + $0x2c0] sm:$0xff] }
 0x165   :  { %v2251_v30 = vadd.f32 %v1124_v27, %v584_v23  ;;  %v2254_v32 = vadd.f32 %v1130_v28, %v1981_v31  ;;  %v587_v31 = vadd.f32 %v1962_v22, %v1983_v33 }
 0x167   :  { %v825_v15 = vpop.f32.mrf.mxu2  ;;  %1546 = vmatmul.msk.f32.gmra.mxu1 %vm215_vm0, %v192_v34 }
 0x168   :  { %v470_v36 = vpop.f32.mrf.mxu0  ;;  %v1005_v37 = vadd.f32 %v1004_v40, %v825_v15 }
 0x169   :  { %v650_v44 = vadd.f32 %v649_v9, %v470_v36 }
 0x16a   :  { %1600 = vmatmul.msk.f32.gmra.mxu3 %vm215_vm0, %v192_v34  ;;  %v200_v34 = vld [vmem:[%s2836_s1 + $0x2e8] sm:$0xff] }
 0x16b   :  { %v1115_v63 = vpop.permute.xlu1 %1114  ;;  %517 = vmatmul.f32.gmra.mxu0 %v189_v39  ;;  %1245 = vrot.lane.b32.xlu1 %v650_v44, %s1623_s16 }
 0x16c   :  { %v1125_v5 = vsel %vm1120_vm1, %v2169_v35, %v1115_v63  ;;  %v1131_v46 = vsel %vm1120_vm1, %v1115_v63, %v2169_v35  ;;  %1255 = vrot.lane.b32.xlu0 %v1005_v37, %s1623_s16  ;;  %875 = vmatmul.f32.gmra.mxu2 %v189_v39  ;;  %v655_v49 = vpop.f32.mrf.mxu1  ;;  %v191_v35 = vld [vmem:[%s2836_s1 + $0x2a0] sm:$0xff]  ;;  %v197_v39 = vld [vmem:[%s2836_s1 + $0x2d0] sm:$0xff] }
 0x16d   :  { %v2274_v47 = vadd.f32 %v1125_v5, %v587_v31  ;;  %v2277_v48 = vadd.f32 %v1131_v46, %v1993_v38  ;;  %v1010_v52 = vpop.f32.mrf.mxu3 }
 0x16e   :  { %v1150_v22 = vpop.permute.xlu2 %1149 }
 0x16f   :  { %v828_v33 = vpop.f32.mrf.mxu2  ;;  %1547 = vmatmul.msk.f32.gmra.mxu1 %vm215_vm0, %v194_v10 }
 0x170   :  { %v473_v50 = vpop.f32.mrf.mxu0  ;;  %v1008_v51 = vadd.f32 %v1007_v41, %v828_v33 }
 0x171   :  { %v653_v53 = vadd.f32 %v652_v26, %v473_v50 }
 0x172   :  { %1601 = vmatmul.msk.f32.gmra.mxu3 %vm215_vm0, %v194_v10 }
 0x173   :  { %520 = vmatmul.f32.gmra.mxu0 %v191_v35  ;;  %1257 = vrot.lane.b32.xlu1 %v1008_v51, %s1623_s16  ;;  %v199_v51 = vld [vmem:[%s2836_s1 + $0x2e0] sm:$0xff] }
 0x174   :  { %1247 = vrot.lane.b32.xlu2 %v653_v53, %s1623_s16  ;;  %878 = vmatmul.f32.gmra.mxu2 %v191_v35  ;;  %v658_v12 = vpop.f32.mrf.mxu1 }
 0x175   :  { %v1013_v1 = vpop.f32.mrf.mxu3 }
 0x176   :  { %v1146_v38 = vpop.permute.xlu0 %1145  ;;  %v1162_v54 = vpop.permute.xlu2 %1161 }
 0x177   :  { %v1172_v57 = vsel %vm1169_vm2, %v1150_v22, %v1162_v54  ;;  %v1178_v58 = vsel %vm1169_vm2, %v1162_v54, %v1150_v22  ;;  %v831_v3 = vpop.f32.mrf.mxu2  ;;  %1548 = vmatmul.msk.f32.gmra.mxu1 %vm215_vm0, %v196_v59 }
 0x178   :  { %v2299_v60 = vadd.f32 %v1172_v57, %v2221_v4  ;;  %v2302_v61 = vadd.f32 %v1178_v58, %v2224_v8  ;;  %v476_v62 = vpop.f32.mrf.mxu0  ;;  %v1011_v17 = vadd.f32 %v1010_v52, %v831_v3 }
 0x179   :  { %v656_v2 = vadd.f32 %v655_v49, %v476_v62  ;;  %v202_v49 = vld [vmem:[%s2836_s1 + $0x2f8] sm:$0xff] }
 0x17a   :  { %1602 = vmatmul.msk.f32.gmra.mxu3 %vm215_vm0, %v196_v59 }
 0x17b   :  { %523 = vmatmul.f32.gmra.mxu0 %v193_v0  ;;  %1249 = vrot.lane.b32.xlu0 %v656_v2, %s1623_s16 }
 0x17c   :  { %1259 = vrot.lane.b32.xlu2 %v1011_v17, %s1623_s16  ;;  %881 = vmatmul.f32.gmra.mxu2 %v193_v0  ;;  %v661_v9 = vpop.f32.mrf.mxu1  ;;  %v201_v17 = vld [vmem:[%s2836_s1 + $0x2f0] sm:$0xff] }
 0x17d   :  { %v1148_v4 = vpop.permute.xlu1 %1147  ;;  %v1016_v21 = vpop.f32.mrf.mxu3 }
 0x17e   :  { %v1158_v8 = vpop.permute.xlu0 %1157 }
 0x17f   :  { %v1170_v19 = vsel %vm1169_vm2, %v1146_v38, %v1158_v8  ;;  %v1176_v6 = vsel %vm1169_vm2, %v1158_v8, %v1146_v38  ;;  %v834_v7 = vpop.f32.mrf.mxu2  ;;  %1549 = vmatmul.msk.f32.gmra.mxu1 %vm215_vm0, %v198_v29 }
 0x180   :  { %v2319_v40 = vadd.f32 %v1170_v19, %v2176_v42  ;;  %v2322_v24 = vadd.f32 %v1176_v6, %v2179_v43  ;;  %v479_v14 = vpop.f32.mrf.mxu0  ;;  %v1014_v16 = vadd.f32 %v1013_v1, %v834_v7  ;;  %v206_v6 = vld [vmem:[%s2836_s1 + $0x318] sm:$0xff] }
 0x181   :  { %v659_v23 = vadd.f32 %v658_v12, %v479_v14  ;;  %v204_v12 = vld [vmem:[%s2836_s1 + $0x308] sm:$0xff] }
 0x182   :  { %1603 = vmatmul.msk.f32.gmra.mxu3 %vm215_vm0, %v198_v29 }
 0x183   :  { %526 = vmatmul.f32.gmra.mxu0 %v195_v18  ;;  %1261 = vrot.lane.b32.xlu0 %v1014_v16, %s1623_s16  ;;  %v203_v16 = vld [vmem:[%s2836_s1 + $0x300] sm:$0xff] }
 0x184   :  { %1251 = vrot.lane.b32.xlu1 %v659_v23, %s1623_s16  ;;  %884 = vmatmul.f32.gmra.mxu2 %v195_v18  ;;  %v664_v26 = vpop.f32.mrf.mxu1 }
 0x185   :  { %v1160_v42 = vpop.permute.xlu1 %1159  ;;  %v1156_v45 = vpop.permute.xlu2 %1155 }
 0x186   :  { %v1171_v43 = vsel %vm1169_vm2, %v1148_v4, %v1160_v42  ;;  %v1177_v25 = vsel %vm1169_vm2, %v1160_v42, %v1148_v4  ;;  %v1019_v41 = vpop.f32.mrf.mxu3 }
 0x187   :  { %v2336_v27 = vadd.f32 %v1171_v43, %v2197_v55  ;;  %v2339_v28 = vadd.f32 %v1177_v25, %v2200_v56  ;;  %v837_v15 = vpop.f32.mrf.mxu2  ;;  %1550 = vmatmul.msk.f32.gmra.mxu1 %vm215_vm0, %v200_v34  ;;  %v208_v25 = vld [vmem:[%s2836_s1 + $0x328] sm:$0xff] }
 0x188   :  { %v482_v36 = vpop.f32.mrf.mxu0  ;;  %v1017_v37 = vadd.f32 %v1016_v21, %v837_v15 }
 0x189   :  { %v662_v44 = vadd.f32 %v661_v9, %v482_v36 }
 0x18a   :  { %1604 = vmatmul.msk.f32.gmra.mxu3 %vm215_vm0, %v200_v34 }
 0x18b   :  { %529 = vmatmul.f32.gmra.mxu0 %v197_v39  ;;  %1253 = vrot.lane.b32.xlu2 %v662_v44, %s1623_s16 }
 0x18c   :  { %1263 = vrot.lane.b32.xlu1 %v1017_v37, %s1623_s16  ;;  %887 = vmatmul.f32.gmra.mxu2 %v197_v39  ;;  %v667_v33 = vpop.f32.mrf.mxu1  ;;  %v205_v37 = vld [vmem:[%s2836_s1 + $0x310] sm:$0xff] }
 0x18d   :  { %v1152_v55 = vpop.permute.xlu0 %1151  ;;  %v1168_v56 = vpop.permute.xlu2 %1167 }
 0x18e   :  { %v1175_v31 = vsel %vm1169_vm2, %v1156_v45, %v1168_v56  ;;  %v1181_v63 = vsel %vm1169_vm2, %v1168_v56, %v1156_v45  ;;  %v1022_v35 = vpop.f32.mrf.mxu3 }
 0x18f   :  { %v2356_v5 = vadd.f32 %v1175_v31, %v2231_v11  ;;  %v2359_v46 = vadd.f32 %v1181_v63, %v2234_v13  ;;  %v840_v22 = vpop.f32.mrf.mxu2  ;;  %1551 = vmatmul.msk.f32.gmra.mxu1 %vm215_vm0, %v202_v49  ;;  %v210_v63 = vld [vmem:[%s2836_s1 + $0x338] sm:$0xff] }
 0x190   :  { %v485_v10 = vpop.f32.mrf.mxu0  ;;  %v1020_v50 = vadd.f32 %v1019_v41, %v840_v22 }
 0x191   :  { %v665_v52 = vadd.f32 %v664_v26, %v485_v10 }
 0x192   :  { %1605 = vmatmul.msk.f32.gmra.mxu3 %vm215_vm0, %v202_v49 }
 0x193   :  { %532 = vmatmul.f32.gmra.mxu0 %v199_v51  ;;  %1265 = vrot.lane.b32.xlu2 %v1020_v50, %s1623_s16  ;;  %v207_v50 = vld [vmem:[%s2836_s1 + $0x320] sm:$0xff] }
 0x194   :  { %1292 = vrot.lane.b32.xlu0 %v665_v52, %s1624_s12  ;;  %890 = vmatmul.f32.gmra.mxu2 %v199_v51  ;;  %v670_v3 = vpop.f32.mrf.mxu1 }
 0x195   :  { %v1164_v11 = vpop.permute.xlu0 %1163 }
 0x196   :  { %v1173_v13 = vsel %vm1169_vm2, %v1152_v55, %v1164_v11  ;;  %v1179_v53 = vsel %vm1169_vm2, %v1164_v11, %v1152_v55  ;;  %v1154_v38 = vpop.permute.xlu1 %1153  ;;  %v1025_v0 = vpop.f32.mrf.mxu3 }
 0x197   :  { %v2376_v54 = vadd.f32 %v1173_v13, %v2251_v30  ;;  %v2379_v57 = vadd.f32 %v1179_v53, %v2254_v32  ;;  %v843_v58 = vpop.f32.mrf.mxu2  ;;  %1552 = vmatmul.msk.f32.gmra.mxu1 %vm215_vm0, %v204_v12 }
 0x198   :  { %v488_v59 = vpop.f32.mrf.mxu0  ;;  %v1023_v62 = vadd.f32 %v1022_v35, %v843_v58 }
 0x199   :  { %v668_v1 = vadd.f32 %v667_v33, %v488_v59 }
 0x19a   :  { %1606 = vmatmul.msk.f32.gmra.mxu3 %vm215_vm0, %v204_v12 }
 0x19b   :  { %535 = vmatmul.f32.gmra.mxu0 %v201_v17  ;;  %1294 = vrot.lane.b32.xlu1 %v668_v1, %s1624_s12 }
 0x19c   :  { %1304 = vrot.lane.b32.xlu0 %v1023_v62, %s1624_s12  ;;  %893 = vmatmul.f32.gmra.mxu2 %v201_v17  ;;  %v673_v19 = vpop.f32.mrf.mxu1  ;;  %v209_v62 = vld [vmem:[%s2836_s1 + $0x330] sm:$0xff] }
 0x19e   :  { %v1166_v30 = vpop.permute.xlu1 %1165  ;;  %v1199_v32 = vpop.permute.xlu2 %1198 }
 0x19f   :  { %v1174_v2 = vsel %vm1169_vm2, %v1154_v38, %v1166_v30  ;;  %v1180_v4 = vsel %vm1169_vm2, %v1166_v30, %v1154_v38  ;;  %v846_v8 = vpop.f32.mrf.mxu2  ;;  %v1028_v18 = vpop.f32.mrf.mxu3  ;;  %1553 = vmatmul.msk.f32.gmra.mxu1 %vm215_vm0, %v206_v6 }
 0x1a0   :  { %v2399_v7 = vadd.f32 %v1174_v2, %v2274_v47  ;;  %v2402_v9 = vadd.f32 %v1180_v4, %v2277_v48  ;;  %v491_v29 = vpop.f32.mrf.mxu0  ;;  %v1026_v14 = vadd.f32 %v1025_v0, %v846_v8 }
 0x1a1   :  { %v671_v21 = vadd.f32 %v670_v3, %v491_v29  ;;  %v212_v3 = vld [vmem:[%s2836_s1 + $0x348] sm:$0xff] }
 0x1a2   :  { %1607 = vmatmul.msk.f32.gmra.mxu3 %vm215_vm0, %v206_v6 }
 0x1a3   :  { %538 = vmatmul.f32.gmra.mxu0 %v203_v16  ;;  %1306 = vrot.lane.b32.xlu1 %v1026_v14, %s1624_s12  ;;  %v211_v14 = vld [vmem:[%s2836_s1 + $0x340] sm:$0xff] }
 0x1a4   :  { %1296 = vrot.lane.b32.xlu2 %v671_v21, %s1624_s12  ;;  %896 = vmatmul.f32.gmra.mxu2 %v203_v16  ;;  %v676_v43 = vpop.f32.mrf.mxu1 }
 0x1a6   :  { %v1195_v47 = vpop.permute.xlu0 %1194  ;;  %v1211_v48 = vpop.permute.xlu2 %1210 }
 0x1a7   :  { %v1221_v23 = vsel %vm1218_vm3, %v1199_v32, %v1211_v48  ;;  %v1227_v42 = vsel %vm1218_vm3, %v1211_v48, %v1199_v32  ;;  %v849_v45 = vpop.f32.mrf.mxu2  ;;  %v1031_v39 = vpop.f32.mrf.mxu3  ;;  %1554 = vmatmul.msk.f32.gmra.mxu1 %vm215_vm0, %v208_v25 }
 0x1a8   :  { %v2420_v15 = vadd.f32 %v1221_v23, %v2299_v60  ;;  %v2423_v26 = vadd.f32 %v1227_v42, %v2302_v61  ;;  %v494_v34 = vpop.f32.mrf.mxu0  ;;  %v1029_v36 = vadd.f32 %v1028_v18, %v849_v45 }
 0x1a9   :  { %v674_v41 = vadd.f32 %v673_v19, %v494_v34  ;;  %v214_v19 = vld [vmem:[%s2836_s1 + $0x358] sm:$0xff]  ;;  %v213_v34 = vld [vmem:[%s2836_s1 + $0x350] sm:$0xff]  ;;  %s1626_s1 = smov 95  }
 0x1aa   :  { %1608 = vmatmul.msk.f32.gmra.mxu3 %vm215_vm0, %v208_v25 }
 0x1ab   :  { %541 = vmatmul.f32.gmra.mxu0 %v205_v37  ;;  %1298 = vrot.lane.b32.xlu0 %v674_v41, %s1624_s12 }
 0x1ac   :  { %1308 = vrot.lane.b32.xlu2 %v1029_v36, %s1624_s12  ;;  %899 = vmatmul.f32.gmra.mxu2 %v205_v37  ;;  %v679_v31 = vpop.f32.mrf.mxu1 }
 0x1ad   :  { %v1197_v60 = vpop.permute.xlu1 %1196 }
 0x1ae   :  { %v1207_v61 = vpop.permute.xlu0 %1206 }
 0x1af   :  { %v1219_v44 = vsel %vm1218_vm3, %v1195_v47, %v1207_v61  ;;  %v1225_v55 = vsel %vm1218_vm3, %v1207_v61, %v1195_v47  ;;  %v852_v56 = vpop.f32.mrf.mxu2  ;;  %v1034_v51 = vpop.f32.mrf.mxu3  ;;  %1555 = vmatmul.msk.f32.gmra.mxu1 %vm215_vm0, %v210_v63 }
 0x1b0   :  { %v2440_v22 = vadd.f32 %v1219_v44, %v2319_v40  ;;  %v2443_v33 = vadd.f32 %v1225_v55, %v2322_v24  ;;  %v497_v49 = vpop.f32.mrf.mxu0  ;;  %v1032_v10 = vadd.f32 %v1031_v39, %v852_v56 }
 0x1b1   :  { %v677_v35 = vadd.f32 %v676_v43, %v497_v49 }
 0x1b2   :  { %1609 = vmatmul.msk.f32.gmra.mxu3 %vm215_vm0, %v210_v63 }
 0x1b3   :  { %544 = vmatmul.f32.gmra.mxu0 %v207_v50  ;;  %1310 = vrot.lane.b32.xlu0 %v1032_v10, %s1624_s12 }
 0x1b4   :  { %1300 = vrot.lane.b32.xlu1 %v677_v35, %s1624_s12  ;;  %902 = vmatmul.f32.gmra.mxu2 %v207_v50  ;;  %v682_v58 = vpop.f32.mrf.mxu1 }
 0x1b5   :  { %v1209_v40 = vpop.permute.xlu1 %1208  ;;  %v1205_v52 = vpop.permute.xlu2 %1204 }
 0x1b6   :  { %v1220_v24 = vsel %vm1218_vm3, %v1197_v60, %v1209_v40  ;;  %v1226_v11 = vsel %vm1218_vm3, %v1209_v40, %v1197_v60 }
 0x1b7   :  { %v2457_v13 = vadd.f32 %v1220_v24, %v2336_v27  ;;  %v2460_v53 = vadd.f32 %v1226_v11, %v2339_v28  ;;  %v855_v38 = vpop.f32.mrf.mxu2  ;;  %v1037_v17 = vpop.f32.mrf.mxu3  ;;  %1556 = vmatmul.msk.f32.gmra.mxu1 %vm215_vm0, %v212_v3 }
 0x1b8   :  { %v500_v12 = vpop.f32.mrf.mxu0  ;;  %v1035_v59 = vadd.f32 %v1034_v51, %v855_v38 }
 0x1b9   :  { %v680_v0 = vadd.f32 %v679_v31, %v500_v12 }
 0x1ba   :  { %1610 = vmatmul.msk.f32.gmra.mxu3 %vm215_vm0, %v212_v3 }
 0x1bb   :  { %547 = vmatmul.f32.gmra.mxu0 %v209_v62  ;;  %1302 = vrot.lane.b32.xlu2 %v680_v0, %s1624_s12 }
 0x1bc   :  { %1312 = vrot.lane.b32.xlu1 %v1035_v59, %s1624_s12  ;;  %905 = vmatmul.f32.gmra.mxu2 %v209_v62  ;;  %v685_v8 = vpop.f32.mrf.mxu1 }
 0x1bd   :  { %v1201_v27 = vpop.permute.xlu0 %1200  ;;  %v1217_v28 = vpop.permute.xlu2 %1216 }
 0x1be   :  { %v1224_v1 = vsel %vm1218_vm3, %v1205_v52, %v1217_v28  ;;  %v1230_v30 = vsel %vm1218_vm3, %v1217_v28, %v1205_v52 }
 0x1bf   :  { %v2477_v32 = vadd.f32 %v1224_v1, %v2356_v5  ;;  %v2480_v2 = vadd.f32 %v1230_v30, %v2359_v46  ;;  %v858_v4 = vpop.f32.mrf.mxu2  ;;  %v1040_v16 = vpop.f32.mrf.mxu3  ;;  %1557 = vmatmul.msk.f32.gmra.mxu1 %vm215_vm0, %v214_v19 }
 0x1c0   :  { %v503_v6 = vpop.f32.mrf.mxu0  ;;  %v1038_v29 = vadd.f32 %v1037_v17, %v858_v4 }
 0x1c1   :  { %v683_v18 = vadd.f32 %v682_v58, %v503_v6 }
 0x1c2   :  { %1611 = vmatmul.msk.f32.gmra.mxu3 %vm215_vm0, %v214_v19 }
 0x1c3   :  { %550 = vmatmul.f32.gmra.mxu0 %v211_v14  ;;  %1314 = vrot.lane.b32.xlu2 %v1038_v29, %s1624_s12 }
 0x1c4   :  { %1341 = vrot.lane.b32.xlu0 %v683_v18, %s1625_s8  ;;  %908 = vmatmul.f32.gmra.mxu2 %v211_v14  ;;  %v688_v45 = vpop.f32.mrf.mxu1 }
 0x1c5   :  { %v1213_v5 = vpop.permute.xlu0 %1212 }
 0x1c6   :  { %v1222_v46 = vsel %vm1218_vm3, %v1201_v27, %v1213_v5  ;;  %v1228_v21 = vsel %vm1218_vm3, %v1213_v5, %v1201_v27  ;;  %v1203_v47 = vpop.permute.xlu1 %1202 }
 0x1c7   :  { %v2497_v48 = vadd.f32 %v1222_v46, %v2376_v54  ;;  %v2500_v23 = vadd.f32 %v1228_v21, %v2379_v57  ;;  %v861_v42 = vpop.f32.mrf.mxu2  ;;  %v1043_v36 = vpop.f32.mrf.mxu3 }
 0x1c8   :  { %v506_v43 = vpop.f32.mrf.mxu0  ;;  %v1041_v25 = vadd.f32 %v1040_v16, %v861_v42 }
 0x1c9   :  { %v686_v37 = vadd.f32 %v685_v8, %v506_v43 }
 0x1cb   :  { %553 = vmatmul.f32.gmra.mxu0 %v213_v34  ;;  %1343 = vrot.lane.b32.xlu1 %v686_v37, %s1625_s8 }
 0x1cc   :  { %1353 = vrot.lane.b32.xlu0 %v1041_v25, %s1625_s8  ;;  %911 = vmatmul.f32.gmra.mxu2 %v213_v34  ;;  %v691_v61 = vpop.f32.mrf.mxu1 }
 0x1ce   :  { %v1215_v54 = vpop.permute.xlu1 %1214  ;;  %v1248_v39 = vpop.permute.xlu2 %1247 }
 0x1cf   :  { %v1223_v57 = vsel %vm1218_vm3, %v1203_v47, %v1215_v54  ;;  %v1229_v41 = vsel %vm1218_vm3, %v1215_v54, %v1203_v47  ;;  %v864_v60 = vpop.f32.mrf.mxu2  ;;  %v1046_v63 = vpop.f32.mrf.mxu3 }
 0x1d0   :  { %v2512_v44 = vadd.f32 %v1223_v57, %v2399_v7  ;;  %v2515_v55 = vadd.f32 %v1229_v41, %v2402_v9  ;;  %v509_v56 = vpop.f32.mrf.mxu0  ;;  %v1044_v31 = vadd.f32 %v1043_v36, %v864_v60 }
 0x1d1   :  { %v689_v49 = vadd.f32 %v688_v45, %v509_v56 }
 0x1d3   :  { %1355 = vrot.lane.b32.xlu1 %v1044_v31, %s1625_s8  ;;  %1345 = vrot.lane.b32.xlu2 %v689_v49, %s1625_s8 }
 0x1d4   :  { %v694_v35 = vpop.f32.mrf.mxu1 }
 0x1d6   :  { %v1244_v10 = vpop.permute.xlu0 %1243  ;;  %v1260_v50 = vpop.permute.xlu2 %1259 }
 0x1d7   :  { %v1270_v51 = vsel %vm1267_vm4, %v1248_v39, %v1260_v50  ;;  %v1276_v7 = vsel %vm1267_vm4, %v1260_v50, %v1248_v39  ;;  %v867_v9 = vpop.f32.mrf.mxu2  ;;  %v1049_v38 = vpop.f32.mrf.mxu3 }
 0x1d8   :  { %v2525_v40 = vadd.f32 %v1270_v51, %v2420_v15  ;;  %v2528_v52 = vadd.f32 %v1276_v7, %v2423_v26  ;;  %v512_v24 = vpop.f32.mrf.mxu0  ;;  %v1047_v11 = vadd.f32 %v1046_v63, %v867_v9 }
 0x1d9   :  { %v692_v58 = vadd.f32 %v691_v61, %v512_v24 }
 0x1db   :  { %1357 = vrot.lane.b32.xlu2 %v1047_v11, %s1625_s8  ;;  %1347 = vrot.lane.b32.xlu0 %v692_v58, %s1625_s8 }
 0x1dc   :  { %v697_v17 = vpop.f32.mrf.mxu1 }
 0x1dd   :  { %v1246_v3 = vpop.permute.xlu1 %1245 }
 0x1de   :  { %v1256_v12 = vpop.permute.xlu0 %1255 }
 0x1df   :  { %v1268_v59 = vsel %vm1267_vm4, %v1244_v10, %v1256_v12  ;;  %v1274_v15 = vsel %vm1267_vm4, %v1256_v12, %v1244_v10  ;;  %v870_v62 = vpop.f32.mrf.mxu2  ;;  %v1052_v1 = vpop.f32.mrf.mxu3 }
 0x1e0   :  { %v2537_v26 = vadd.f32 %v1268_v59, %v2440_v22  ;;  %v2540_v0 = vadd.f32 %v1274_v15, %v2443_v33  ;;  %v515_v27 = vpop.f32.mrf.mxu0  ;;  %v1050_v28 = vadd.f32 %v1049_v38, %v870_v62 }
 0x1e1   :  { %v695_v30 = vadd.f32 %v694_v35, %v515_v27 }
 0x1e3   :  { %1359 = vrot.lane.b32.xlu0 %v1050_v28, %s1625_s8  ;;  %1349 = vrot.lane.b32.xlu1 %v695_v30, %s1625_s8 }
 0x1e4   :  { %v700_v14 = vpop.f32.mrf.mxu1 }
 0x1e5   :  { %v1258_v4 = vpop.permute.xlu1 %1257  ;;  %v1254_v8 = vpop.permute.xlu2 %1253 }
 0x1e6   :  { %v1269_v19 = vsel %vm1267_vm4, %v1246_v3, %v1258_v4  ;;  %v1275_v22 = vsel %vm1267_vm4, %v1258_v4, %v1246_v3 }
 0x1e7   :  { %v2549_v6 = vadd.f32 %v1269_v19, %v2457_v13  ;;  %v2552_v33 = vadd.f32 %v1275_v22, %v2460_v53  ;;  %v873_v29 = vpop.f32.mrf.mxu2  ;;  %v1055_v5 = vpop.f32.mrf.mxu3 }
 0x1e8   :  { %v518_v16 = vpop.f32.mrf.mxu0  ;;  %v1053_v18 = vadd.f32 %v1052_v1, %v873_v29 }
 0x1e9   :  { %v698_v46 = vadd.f32 %v697_v17, %v518_v16 }
 0x1eb   :  { %1361 = vrot.lane.b32.xlu1 %v1053_v18, %s1625_s8  ;;  %1351 = vrot.lane.b32.xlu2 %v698_v46, %s1625_s8 }
 0x1ec   :  { %v703_v25 = vpop.f32.mrf.mxu1 }
 0x1ed   :  { %v1250_v21 = vpop.permute.xlu0 %1249  ;;  %v1266_v47 = vpop.permute.xlu2 %1265 }
 0x1ee   :  { %v1273_v42 = vsel %vm1267_vm4, %v1254_v8, %v1266_v47  ;;  %v1279_v13 = vsel %vm1267_vm4, %v1266_v47, %v1254_v8 }
 0x1ef   :  { %v2561_v53 = vadd.f32 %v1273_v42, %v2477_v32  ;;  %v2564_v45 = vadd.f32 %v1279_v13, %v2480_v2  ;;  %v876_v43 = vpop.f32.mrf.mxu2  ;;  %v1058_v37 = vpop.f32.mrf.mxu3 }
 0x1f0   :  { %v521_v34 = vpop.f32.mrf.mxu0  ;;  %v1056_v36 = vadd.f32 %v1055_v5, %v876_v43 }
 0x1f1   :  { %v701_v54 = vadd.f32 %v700_v14, %v521_v34 }
 0x1f3   :  { %1363 = vrot.lane.b32.xlu2 %v1056_v36, %s1625_s8  ;;  %1390 = vrot.lane.b32.xlu0 %v701_v54, %s1626_s1 }
 0x1f4   :  { %v706_v56 = vpop.f32.mrf.mxu1 }
 0x1f5   :  { %v1262_v39 = vpop.permute.xlu0 %1261 }
 0x1f6   :  { %v1271_v57 = vsel %vm1267_vm4, %v1250_v21, %v1262_v39  ;;  %v1277_v32 = vsel %vm1267_vm4, %v1262_v39, %v1250_v21  ;;  %v1252_v2 = vpop.permute.xlu1 %1251 }
 0x1f7   :  { %v2573_v41 = vadd.f32 %v1271_v57, %v2497_v48  ;;  %v2576_v60 = vadd.f32 %v1277_v32, %v2500_v23  ;;  %v879_v61 = vpop.f32.mrf.mxu2  ;;  %v1061_v49 = vpop.f32.mrf.mxu3 }
 0x1f8   :  { %v524_v31 = vpop.f32.mrf.mxu0  ;;  %v1059_v63 = vadd.f32 %v1058_v37, %v879_v61 }
 0x1f9   :  { %v704_v10 = vadd.f32 %v703_v25, %v524_v31 }
 0x1fb   :  { %1402 = vrot.lane.b32.xlu0 %v1059_v63, %s1626_s1  ;;  %1392 = vrot.lane.b32.xlu1 %v704_v10, %s1626_s1 }
 0x1fc   :  { %v709_v9 = vpop.f32.mrf.mxu1 }
 0x1fe   :  { %v1264_v50 = vpop.permute.xlu1 %1263  ;;  %v1297_v51 = vpop.permute.xlu2 %1296 }
 0x1ff   :  { %v1272_v7 = vsel %vm1267_vm4, %v1252_v2, %v1264_v50  ;;  %v1278_v48 = vsel %vm1267_vm4, %v1264_v50, %v1252_v2  ;;  %v882_v23 = vpop.f32.mrf.mxu2  ;;  %v1064_v58 = vpop.f32.mrf.mxu3 }
 0x200   :  { %v2585_v35 = vadd.f32 %v1272_v7, %v2512_v44  ;;  %v2588_v24 = vadd.f32 %v1278_v48, %v2515_v55  ;;  %v527_v11 = vpop.f32.mrf.mxu0  ;;  %v1062_v38 = vadd.f32 %v1061_v49, %v882_v23 }
 0x201   :  { %v707_v3 = vadd.f32 %v706_v56, %v527_v11 }
 0x203   :  { %1404 = vrot.lane.b32.xlu1 %v1062_v38, %s1626_s1  ;;  %1394 = vrot.lane.b32.xlu2 %v707_v3, %s1626_s1 }
 0x204   :  { %v712_v62 = vpop.f32.mrf.mxu1 }
 0x206   :  { %v1293_v12 = vpop.permute.xlu0 %1292  ;;  %v1309_v59 = vpop.permute.xlu2 %1308 }
 0x207   :  { %v1319_v15 = vsel %vm1316_vm5, %v1297_v51, %v1309_v59  ;;  %v1325_v44 = vsel %vm1316_vm5, %v1309_v59, %v1297_v51  ;;  %v885_v55 = vpop.f32.mrf.mxu2  ;;  %v1067_v30 = vpop.f32.mrf.mxu3 }
 0x208   :  { %v2598_v17 = vadd.f32 %v1319_v15, %v2525_v40  ;;  %v2601_v27 = vadd.f32 %v1325_v44, %v2528_v52  ;;  %v530_v28 = vpop.f32.mrf.mxu0  ;;  %v1065_v1 = vadd.f32 %v1064_v58, %v885_v55 }
 0x209   :  { %v710_v4 = vadd.f32 %v709_v9, %v530_v28 }
 0x20b   :  { %1406 = vrot.lane.b32.xlu2 %v1065_v1, %s1626_s1  ;;  %1396 = vrot.lane.b32.xlu0 %v710_v4, %s1626_s1 }
 0x20c   :  { %v715_v14 = vpop.f32.mrf.mxu1 }
 0x20d   :  { %v1295_v8 = vpop.permute.xlu1 %1294 }
 0x20e   :  { %v1305_v19 = vpop.permute.xlu0 %1304 }
 0x20f   :  { %v1317_v22 = vsel %vm1316_vm5, %v1293_v12, %v1305_v19  ;;  %v1323_v40 = vsel %vm1316_vm5, %v1305_v19, %v1293_v12  ;;  %v888_v29 = vpop.f32.mrf.mxu2  ;;  %v1070_v46 = vpop.f32.mrf.mxu3 }
 0x210   :  { %v2610_v52 = vadd.f32 %v1317_v22, %v2537_v26  ;;  %v2613_v16 = vadd.f32 %v1323_v40, %v2540_v0  ;;  %v533_v18 = vpop.f32.mrf.mxu0  ;;  %v1068_v5 = vadd.f32 %v1067_v30, %v888_v29 }
 0x211   :  { %v713_v21 = vadd.f32 %v712_v62, %v533_v18 }
 0x213   :  { %1408 = vrot.lane.b32.xlu0 %v1068_v5, %s1626_s1  ;;  %1398 = vrot.lane.b32.xlu1 %v713_v21, %s1626_s1 }
 0x214   :  { %v718_v34 = vpop.f32.mrf.mxu1 }
 0x215   :  { %v1307_v47 = vpop.permute.xlu1 %1306  ;;  %v1303_v42 = vpop.permute.xlu2 %1302 }
 0x216   :  { %v1318_v13 = vsel %vm1316_vm5, %v1295_v8, %v1307_v47  ;;  %v1324_v26 = vsel %vm1316_vm5, %v1307_v47, %v1295_v8 }
 0x217   :  { %v2622_v43 = vadd.f32 %v1318_v13, %v2549_v6  ;;  %v2625_v0 = vadd.f32 %v1324_v26, %v2552_v33  ;;  %v891_v25 = vpop.f32.mrf.mxu2  ;;  %v1073_v54 = vpop.f32.mrf.mxu3 }
 0x218   :  { %v536_v36 = vpop.f32.mrf.mxu0  ;;  %v1071_v37 = vadd.f32 %v1070_v46, %v891_v25 }
 0x219   :  { %v716_v39 = vadd.f32 %v715_v14, %v536_v36 }
 0x21b   :  { %1410 = vrot.lane.b32.xlu1 %v1071_v37, %s1626_s1  ;;  %1400 = vrot.lane.b32.xlu2 %v716_v39, %s1626_s1 }
 0x21c   :  { %v721_v31 = vpop.f32.mrf.mxu1 }
 0x21d   :  { %v1299_v57 = vpop.permute.xlu0 %1298  ;;  %v1315_v32 = vpop.permute.xlu2 %1314 }
 0x21e   :  { %v1322_v2 = vsel %vm1316_vm5, %v1303_v42, %v1315_v32  ;;  %v1328_v6 = vsel %vm1316_vm5, %v1315_v32, %v1303_v42 }
 0x21f   :  { %v2634_v33 = vadd.f32 %v1322_v2, %v2561_v53  ;;  %v2637_v61 = vadd.f32 %v1328_v6, %v2564_v45  ;;  %v894_v56 = vpop.f32.mrf.mxu2  ;;  %v1076_v10 = vpop.f32.mrf.mxu3 }
 0x220   :  { %v539_v63 = vpop.f32.mrf.mxu0  ;;  %v1074_v49 = vadd.f32 %v1073_v54, %v894_v56 }
 0x221   :  { %v719_v50 = vadd.f32 %v718_v34, %v539_v63 }
 0x223   :  { %1412 = vrot.lane.b32.xlu2 %v1074_v49, %s1626_s1  ;;  %1439 = vrot.lane.b32.xlu0 %v719_v50, %s1627_s11 }
 0x224   :  { %v724_v11 = vpop.f32.mrf.mxu1 }
 0x225   :  { %v1311_v51 = vpop.permute.xlu0 %1310 }
 0x226   :  { %v1320_v7 = vsel %vm1316_vm5, %v1299_v57, %v1311_v51  ;;  %v1326_v53 = vsel %vm1316_vm5, %v1311_v51, %v1299_v57  ;;  %v1301_v45 = vpop.permute.xlu1 %1300 }
 0x227   :  { %v2646_v48 = vadd.f32 %v1320_v7, %v2573_v41  ;;  %v2649_v23 = vadd.f32 %v1326_v53, %v2576_v60  ;;  %v897_v9 = vpop.f32.mrf.mxu2  ;;  %v1079_v3 = vpop.f32.mrf.mxu3 }
 0x228   :  { %v542_v38 = vpop.f32.mrf.mxu0  ;;  %v1077_v58 = vadd.f32 %v1076_v10, %v897_v9 }
 0x229   :  { %v722_v12 = vadd.f32 %v721_v31, %v542_v38 }
 0x22b   :  { %1451 = vrot.lane.b32.xlu0 %v1077_v58, %s1627_s11  ;;  %1441 = vrot.lane.b32.xlu1 %v722_v12, %s1627_s11 }
 0x22c   :  { %v727_v8 = vpop.f32.mrf.mxu1 }
 0x22d   :  { %v1346_v59 = vpop.permute.xlu2 %1345 }
 0x22e   :  { %v1313_v15 = vpop.permute.xlu1 %1312 }
 0x22f   :  { %v1321_v44 = vsel %vm1316_vm5, %v1301_v45, %v1313_v15  ;;  %v1327_v41 = vsel %vm1316_vm5, %v1313_v15, %v1301_v45  ;;  %v900_v60 = vpop.f32.mrf.mxu2  ;;  %v1082_v30 = vpop.f32.mrf.mxu3 }
 0x230   :  { %v2658_v55 = vadd.f32 %v1321_v44, %v2585_v35  ;;  %v2661_v62 = vadd.f32 %v1327_v41, %v2588_v24  ;;  %v545_v28 = vpop.f32.mrf.mxu0  ;;  %v1080_v1 = vadd.f32 %v1079_v3, %v900_v60 }
 0x231   :  { %v725_v4 = vadd.f32 %v724_v11, %v545_v28 }
 0x233   :  { %1453 = vrot.lane.b32.xlu1 %v1080_v1, %s1627_s11  ;;  %1443 = vrot.lane.b32.xlu2 %v725_v4, %s1627_s11 }
 0x234   :  { %v730_v47 = vpop.f32.mrf.mxu1 }
 0x235   :  { %v1358_v19 = vpop.permute.xlu2 %1357 }
 0x236   :  { %v1342_v22 = vpop.permute.xlu0 %1341  ;;  %v1368_v35 = vsel %vm1365_vm6, %v1346_v59, %v1358_v19  ;;  %v1374_v24 = vsel %vm1365_vm6, %v1358_v19, %v1346_v59 }
 0x237   :  { %v2671_v40 = vadd.f32 %v1368_v35, %v2598_v17  ;;  %v2674_v29 = vadd.f32 %v1374_v24, %v2601_v27  ;;  %v903_v14 = vpop.f32.mrf.mxu2  ;;  %v1085_v46 = vpop.f32.mrf.mxu3 }
 0x238   :  { %v548_v18 = vpop.f32.mrf.mxu0  ;;  %v1083_v5 = vadd.f32 %v1082_v30, %v903_v14 }
 0x239   :  { %v728_v21 = vadd.f32 %v727_v8, %v548_v18 }
 0x23b   :  { %1455 = vrot.lane.b32.xlu2 %v1083_v5, %s1627_s11  ;;  %1445 = vrot.lane.b32.xlu0 %v728_v21, %s1627_s11 }
 0x23c   :  { %v733_v6 = vpop.f32.mrf.mxu1 }
 0x23d   :  { %v1344_v42 = vpop.permute.xlu1 %1343 }
 0x23e   :  { %v1354_v13 = vpop.permute.xlu0 %1353 }
 0x23f   :  { %v1366_v26 = vsel %vm1365_vm6, %v1342_v22, %v1354_v13  ;;  %v1372_v17 = vsel %vm1365_vm6, %v1354_v13, %v1342_v22  ;;  %v906_v27 = vpop.f32.mrf.mxu2  ;;  %v1088_v39 = vpop.f32.mrf.mxu3 }
 0x240   :  { %v2683_v25 = vadd.f32 %v1366_v26, %v2610_v52  ;;  %v2686_v34 = vadd.f32 %v1372_v17, %v2613_v16  ;;  %v551_v36 = vpop.f32.mrf.mxu0  ;;  %v1086_v37 = vadd.f32 %v1085_v46, %v906_v27 }
 0x241   :  { %v731_v54 = vadd.f32 %v730_v47, %v551_v36 }
 0x243   :  { %1457 = vrot.lane.b32.xlu0 %v1086_v37, %s1627_s11  ;;  %1447 = vrot.lane.b32.xlu1 %v731_v54, %s1627_s11 }
 0x245   :  { %v1356_v57 = vpop.permute.xlu1 %1355  ;;  %v1352_v32 = vpop.permute.xlu2 %1351 }
 0x246   :  { %v1367_v2 = vsel %vm1365_vm6, %v1344_v42, %v1356_v57  ;;  %v1373_v52 = vsel %vm1365_vm6, %v1356_v57, %v1344_v42 }
 0x247   :  { %v2695_v16 = vadd.f32 %v1367_v2, %v2622_v43  ;;  %v2698_v56 = vadd.f32 %v1373_v52, %v2625_v0  ;;  %v909_v31 = vpop.f32.mrf.mxu2  ;;  %v1091_v50 = vpop.f32.mrf.mxu3 }
 0x248   :  { %v554_v63 = vpop.f32.mrf.mxu0  ;;  %v1089_v49 = vadd.f32 %v1088_v39, %v909_v31 }
 0x249   :  { %v734_v10 = vadd.f32 %v733_v6, %v554_v63 }
 0x24b   :  { %1459 = vrot.lane.b32.xlu1 %v1089_v49, %s1627_s11  ;;  %1449 = vrot.lane.b32.xlu2 %v734_v10, %s1627_s11 }
 0x24d   :  { %v1348_v51 = vpop.permute.xlu0 %1347  ;;  %v1364_v7 = vpop.permute.xlu2 %1363 }
 0x24e   :  { %v1371_v53 = vsel %vm1365_vm6, %v1352_v32, %v1364_v7  ;;  %v1377_v43 = vsel %vm1365_vm6, %v1364_v7, %v1352_v32 }
 0x24f   :  { %v2707_v0 = vadd.f32 %v1371_v53, %v2634_v33  ;;  %v2710_v45 = vadd.f32 %v1377_v43, %v2637_v61  ;;  %v912_v9 = vpop.f32.mrf.mxu2 }
 0x250   :  { %v1092_v11 = vadd.f32 %v1091_v50, %v912_v9 }
 0x253   :  { %1461 = vrot.lane.b32.xlu2 %v1092_v11, %s1627_s11 }
 0x255   :  { %v1360_v38 = vpop.permute.xlu0 %1359  ;;  %v1350_v58 = vpop.permute.xlu1 %1349 }
 0x256   :  { %v1369_v3 = vsel %vm1365_vm6, %v1348_v51, %v1360_v38  ;;  %v1375_v12 = vsel %vm1365_vm6, %v1360_v38, %v1348_v51 }
 0x257   :  { %v2718_v59 = vadd.f32 %v1369_v3, %v2646_v48  ;;  %v2721_v33 = vadd.f32 %v1375_v12, %v2649_v23 }
 0x25d   :  { %v1362_v61 = vpop.permute.xlu1 %1361  ;;  %v1395_v28 = vpop.permute.xlu2 %1394 }
 0x25e   :  { %v1370_v15 = vsel %vm1365_vm6, %v1350_v58, %v1362_v61  ;;  %v1376_v44 = vsel %vm1365_vm6, %v1362_v61, %v1350_v58 }
 0x25f   :  { %v2728_v41 = vadd.f32 %v1370_v15, %v2658_v55  ;;  %v2731_v60 = vadd.f32 %v1376_v44, %v2661_v62 }
 0x265   :  { %v1391_v1 = vpop.permute.xlu0 %1390  ;;  %v1407_v48 = vpop.permute.xlu2 %1406 }
 0x266   :  { %v1417_v55 = vsel %vm1414_vm7, %v1395_v28, %v1407_v48  ;;  %v1423_v62 = vsel %vm1414_vm7, %v1407_v48, %v1395_v28 }
 0x267   :  { %v1431_v5 = vadd.f32 %v1417_v55, %v2671_v40  ;;  %v1432_v46 = vadd.f32 %v1423_v62, %v2674_v29 }
 0x26d   :  { %v1393_v30 = vpop.permute.xlu1 %1392  ;;  %v1403_v4 = vpop.permute.xlu0 %1402 }
 0x26e   :  { %v1415_v27 = vsel %vm1414_vm7, %v1391_v1, %v1403_v4  ;;  %v1421_v40 = vsel %vm1414_vm7, %v1403_v4, %v1391_v1 }
 0x26f   :  { %v1427_v29 = vadd.f32 %v1415_v27, %v2683_v25  ;;  %v1428_v36 = vadd.f32 %v1421_v40, %v2686_v34 }
 0x275   :  { %v1401_v23 = vpop.permute.xlu2 %1400  ;;  %v1405_v8 = vpop.permute.xlu1 %1404 }
 0x276   :  { %v1416_v52 = vsel %vm1414_vm7, %v1393_v30, %v1405_v8  ;;  %v1422_v25 = vsel %vm1414_vm7, %v1405_v8, %v1393_v30 }
 0x277   :  { %v1429_v34 = vadd.f32 %v1416_v52, %v2695_v16  ;;  %v1430_v6 = vadd.f32 %v1422_v25, %v2698_v56 }
 0x27d   :  { %v1397_v19 = vpop.permute.xlu0 %1396  ;;  %v1413_v22 = vpop.permute.xlu2 %1412 }
 0x27e   :  { %v1420_v7 = vsel %vm1414_vm7, %v1401_v23, %v1413_v22  ;;  %v1426_v16 = vsel %vm1414_vm7, %v1413_v22, %v1401_v23 }
 0x27f   :  { %v1437_v56 = vadd.f32 %v1420_v7, %v2707_v0  ;;  %v1438_v53 = vadd.f32 %v1426_v16, %v2710_v45 }
 0x285   :  { %v2733_v35 = vpop.permute.xlu1 %1398  ;;  %v1409_v24 = vpop.permute.xlu0 %1408 }
 0x286   :  { %v1418_v12 = vsel %vm1414_vm7, %v1397_v19, %v1409_v24  ;;  %v1424_v0 = vsel %vm1414_vm7, %v1409_v24, %v1397_v19 }
 0x287   :  { %v1433_v45 = vadd.f32 %v1418_v12, %v2718_v59  ;;  %v1434_v61 = vadd.f32 %v1424_v0, %v2721_v33 }
 0x28d   :  { %v1444_v14 = vpop.permute.xlu2 %1443  ;;  %v1411_v18 = vpop.permute.xlu1 %1410 }
 0x28e   :  { %v1419_v59 = vsel %vm1414_vm7, %v2733_v35, %v1411_v18  ;;  %v1425_v33 = vsel %vm1414_vm7, %v1411_v18, %v2733_v35 }
 0x28f   :  { %v1435_v4 = vadd.f32 %v1419_v59, %v2728_v41  ;;  %v1436_v23 = vadd.f32 %v1425_v33, %v2731_v60 }
 0x295   :  { %v1440_v21 = vpop.permute.xlu0 %1439  ;;  %v1456_v47 = vpop.permute.xlu2 %1455 }
 0x296   :  { %v1466_v42 = vsel %vm1463_vm8, %v1444_v14, %v1456_v47  ;;  %v1472_v13 = vsel %vm1463_vm8, %v1456_v47, %v1444_v14 }
 0x297   :  { %v1480_v26 = vadd.f32 %v1466_v42, %v1431_v5  ;;  %v1481_v17 = vadd.f32 %v1472_v13, %v1432_v46 }
 0x299   :  { %1492 = vst [vmem:[%s2837_s2 + $0x20] sm:$0xff] %v1480_v26 }
 0x29a   :  { %1493 = vst [vmem:[%s2837_s2 + $0x28] sm:$0xff] %v1481_v17 }
 0x29d   :  { %v1452_v37 = vpop.permute.xlu0 %1451  ;;  %v1442_v54 = vpop.permute.xlu1 %1441 }
 0x29e   :  { %v1464_v39 = vsel %vm1463_vm8, %v1440_v21, %v1452_v37  ;;  %v1470_v57 = vsel %vm1463_vm8, %v1452_v37, %v1440_v21 }
 0x29f   :  { %v1476_v32 = vadd.f32 %v1464_v39, %v1427_v29  ;;  %v1477_v2 = vadd.f32 %v1470_v57, %v1428_v36 }
 0x2a1   :  { %1488 = vst [vmem:[%s2837_s2] sm:$0xff] %v1476_v32 }
 0x2a2   :  { %1489 = vst [vmem:[%s2837_s2 + $0x8] sm:$0xff] %v1477_v2 }
 0x2a5   :  { %v1454_v31 = vpop.permute.xlu1 %1453  ;;  %v1450_v63 = vpop.permute.xlu2 %1449 }
 0x2a6   :  { %v1465_v49 = vsel %vm1463_vm8, %v1442_v54, %v1454_v31  ;;  %v1471_v10 = vsel %vm1463_vm8, %v1454_v31, %v1442_v54 }
 0x2a7   :  { %v1478_v50 = vadd.f32 %v1465_v49, %v1429_v34  ;;  %v1479_v51 = vadd.f32 %v1471_v10, %v1430_v6 }
 0x2a9   :  { %1490 = vst [vmem:[%s2837_s2 + $0x10] sm:$0xff] %v1478_v50 }
 0x2aa   :  { %1491 = vst [vmem:[%s2837_s2 + $0x18] sm:$0xff] %v1479_v51 }
 0x2ad   :  { %v1446_v43 = vpop.permute.xlu0 %1445  ;;  %v1462_v9 = vpop.permute.xlu2 %1461 }
 0x2ae   :  { %v1469_v11 = vsel %vm1463_vm8, %v1450_v63, %v1462_v9  ;;  %v1475_v38 = vsel %vm1463_vm8, %v1462_v9, %v1450_v63 }
 0x2af   :  { %v1486_v58 = vadd.f32 %v1469_v11, %v1437_v56  ;;  %v1487_v3 = vadd.f32 %v1475_v38, %v1438_v53 }
 0x2b1   :  { %1498 = vst [vmem:[%s2837_s2 + $0x50] sm:$0xff] %v1486_v58 }
 0x2b2   :  { %1499 = vst [vmem:[%s2837_s2 + $0x58] sm:$0xff] %v1487_v3 }
 0x2b5   :  { %v1458_v15 = vpop.permute.xlu0 %1457  ;;  %v1448_v44 = vpop.permute.xlu1 %1447 }
 0x2b6   :  { %v1467_v28 = vsel %vm1463_vm8, %v1446_v43, %v1458_v15  ;;  %v1473_v1 = vsel %vm1463_vm8, %v1458_v15, %v1446_v43 }
 0x2b7   :  { %v1482_v48 = vadd.f32 %v1467_v28, %v1433_v45  ;;  %v1483_v30 = vadd.f32 %v1473_v1, %v1434_v61 }
 0x2b9   :  { %1494 = vst [vmem:[%s2837_s2 + $0x30] sm:$0xff] %v1482_v48 }
 0x2ba   :  { %1495 = vst [vmem:[%s2837_s2 + $0x38] sm:$0xff] %v1483_v30 }
 0x2bd   :  { %v1460_v8 = vpop.permute.xlu1 %1459 }
 0x2be   :  { %v1468_v19 = vsel %vm1463_vm8, %v1448_v44, %v1460_v8  ;;  %v1474_v22 = vsel %vm1463_vm8, %v1460_v8, %v1448_v44 }
 0x2bf   :  { %v1484_v24 = vadd.f32 %v1468_v19, %v1435_v4  ;;  %v1485_v14 = vadd.f32 %v1474_v22, %v1436_v23 }
 0x2c1   :  { %1496 = vst [vmem:[%s2837_s2 + $0x40] sm:$0xff] %v1484_v24 }
 0x2c2   :  { %1497 = vst [vmem:[%s2837_s2 + $0x48] sm:$0xff] %v1485_v14 }

</bundles_post_ra>
